<compile_context>
chip_gen: v7x
topology: tpu7x:2x2x1
jax: 0.10.0
libtpu: 0.0.40
codegen_flags: <defaults>
</compile_context>

<pallas_src>
import functools

import jax
import jax.numpy as jnp
import numpy as np
from jax import lax
from jax.experimental import pallas as pl
from jax.experimental.pallas import tpu as pltpu


def _layernorm(t, gamma, beta, eps=1e-5):
    mu = jnp.mean(t, axis=-1, keepdims=True)
    var = jnp.mean((t - mu) ** 2, axis=-1, keepdims=True)
    return (t - mu) * jax.lax.rsqrt(var + eps) * gamma + beta


def transformer_block_kernel(
    x_ref,                     # (N, D) f32 — rows of one batch element
    g1_ref, b1_ref,            # (1, D) f32 pre_norm gamma / beta
    wq_ref, wk_ref, wv_ref,    # (H, D, dh) bf16 per-head slabs; scale folded in Wq
    wout_ref,                  # (H, dh, D) bf16 per-head slabs of to_out
    g2_ref, b2_ref,            # (1, D) f32 ff_norm gamma / beta
    wproj_ref, bproj_ref,      # (D, 2*inner) bf16, (1, 2*inner) f32
    wffo_ref, bffo_ref,        # (inner, D) bf16, (1, D) f32
    o_ref,                     # (N, D)
    *, num_heads,
):
    seq, dim = x_ref.shape
    x = x_ref[...]                                     # (N, D) f32

    # ---------------- self-attention branch ----------------
    xn = _layernorm(x, g1_ref[0], b1_ref[0])           # f32 (VPU/EUP)
    xn_b = xn.astype(jnp.bfloat16)                     # bf16 only at MXU inputs

    def head_body(h, acc):
        # Per-head weight slabs selected by leading-dim indexing (no lane
        # slicing, no padding).  1/sqrt(dim_heads) is pre-folded into wq.
        q = jnp.dot(xn_b, wq_ref[h], preferred_element_type=jnp.float32)
        k = jnp.dot(xn_b, wk_ref[h], preferred_element_type=jnp.float32)
        v = jnp.dot(xn_b, wv_ref[h], preferred_element_type=jnp.float32)
        s = lax.dot_general(                           # q @ k^T, f32 accumulate
            q.astype(jnp.bfloat16), k.astype(jnp.bfloat16),
            (((1,), (1,)), ((), ())),
            preferred_element_type=jnp.float32)        # (N, N)
        m = jnp.max(s, axis=-1, keepdims=True)
        p = jnp.exp(s - m)                             # unnormalized, f32
        l = jnp.sum(p, axis=-1, keepdims=True)
        o_un = jnp.dot(p.astype(jnp.bfloat16), v.astype(jnp.bfloat16),
                       preferred_element_type=jnp.float32)   # (N, dh)
        # Deferred softmax normalization: reciprocal on the EUP slot, then
        # O(N*dh) VPU muls instead of O(N^2) divides.
        o_h = (o_un * pl.reciprocal(l, approx=True)).astype(jnp.bfloat16)
        # to_out accumulated per head: sum_h o_h @ Wout_h  ==  concat(o) @ Wout.
        return acc + jnp.dot(o_h, wout_ref[h],
                             preferred_element_type=jnp.float32)   # (N, D)

    attn_out = lax.fori_loop(
        0, num_heads, head_body, jnp.zeros((seq, dim), jnp.float32),
        unroll=num_heads <= 4)                         # unroll only small counts

    x1 = x + attn_out

    # ---------------- feed-forward (GLU) branch ----------------
    xn2 = _layernorm(x1, g2_ref[0], b2_ref[0])
    y = jnp.dot(xn2.astype(jnp.bfloat16), wproj_ref[...],
                preferred_element_type=jnp.float32) + bproj_ref[0]  # (N, 2*inner)
    inner = wffo_ref.shape[0]
    # inner is a multiple of 128 (guarded in the wrapper) so this split is a
    # lane-aligned free view.
    a = y[:, :inner]
    gate = y[:, inner:]
    hg = a * (gate * jax.nn.sigmoid(gate))             # a * SiLU(gate), f32
    ff_out = jnp.dot(hg.astype(jnp.bfloat16), wffo_ref[...],
                     preferred_element_type=jnp.float32) + bffo_ref[0]

    o_ref[...] = (x1 + ff_out).astype(o_ref.dtype)     # lane-dense full vst


def _prepare_params(params, *, num_heads, dim_heads):
    """One-time layout plumbing (model-load time), outside the kernel: split
    Wqkv into per-head slabs (H, D, dh) / (H, dh, D), fold the softmax scale
    into Wq, and cast matmul weights to bf16.  No zero padding."""
    D = params['wqkv'].shape[0]
    scale = 1.0 / (dim_heads ** 0.5)

    wqkv = params['wqkv']
    wq, wk, wv = wqkv[:, :D], wqkv[:, D:2 * D], wqkv[:, 2 * D:]

    def per_head_cols(w, fold_scale=False):
        # (D, H*dh) -> (H, D, dh): head h's columns as a leading-dim slab.
        if fold_scale:
            w = w * scale
        return jnp.transpose(
            w.reshape(D, num_heads, dim_heads), (1, 0, 2)).astype(jnp.bfloat16)

    def per_head_rows(w):
        # (H*dh, D) -> (H, dh, D): head h's rows of to_out.
        return w.reshape(num_heads, dim_heads, D).astype(jnp.bfloat16)

    return dict(
        g1=params['g1'], b1=params['b1'],
        wq=per_head_cols(wq, fold_scale=True),
        wk=per_head_cols(wk), wv=per_head_cols(wv),
        wout=per_head_rows(params['wout']),
        g2=params['g2'], b2=params['b2'],
        wproj=params['wproj'].astype(jnp.bfloat16), bproj=params['bproj'],
        wffo=params['wffo'].astype(jnp.bfloat16), bffo=params['bffo'],
    )


def transformer_block(x, params, *, num_heads, dim_heads):
    B, N, D = x.shape
    inner = params['wffo'].shape[0]
    assert num_heads * dim_heads == D
    assert D % 128 == 0, "dim must be a multiple of 128 (lane-dense activations)"
    assert inner % 128 == 0, "a/gate split must land on a 128-lane boundary"
    assert N % 8 == 0, "seq rows per grid step must be sublane-aligned"

    kp = _prepare_params(params, num_heads=num_heads, dim_heads=dim_heads)
    x2d = x.reshape(B * N, D)   # wrapper-side reshape: (B*N, D) row layout

    kernel = functools.partial(transformer_block_kernel, num_heads=num_heads)

    def const(shape):
        # Resident operand: constant block index across all grid steps.
        return pl.BlockSpec(shape, lambda b, _s=shape: (0,) * len(_s))

    # Advisory cost estimate for XLA's scheduler around the fused call.
    R = B * N
    flops = 6 * R * D * D                               # q/k/v projections
    flops += 4 * B * num_heads * N * N * dim_heads      # scores + PV
    flops += 2 * R * D * D                              # to_out
    flops += 2 * R * D * 2 * inner + 2 * R * inner * D  # GLU proj + out
    transcendentals = B * num_heads * N * N + R * inner  # exp + sigmoid
    bytes_accessed = int(sum(v.size * v.dtype.itemsize for v in kp.values())
                         + 2 * x2d.size * x2d.dtype.itemsize)

    out2d = pl.pallas_call(
        kernel,
        out_shape=jax.ShapeDtypeStruct((R, D), x.dtype),
        grid_spec=pltpu.PrefetchScalarGridSpec(
            num_scalar_prefetch=0,
            grid=(B,),   # one batch element per step: pipelined, v7x-parallel
            in_specs=[
                pl.BlockSpec((N, D), lambda b: (b, 0)),          # x rows (tiled)
                const((1, D)), const((1, D)),                    # pre_norm g/b
                const((num_heads, D, dim_heads)),                # Wq (per head)
                const((num_heads, D, dim_heads)),                # Wk
                const((num_heads, D, dim_heads)),                # Wv
                const((num_heads, dim_heads, D)),                # Wout
                const((1, D)), const((1, D)),                    # ff_norm g/b
                const((D, 2 * inner)), const((1, 2 * inner)),    # Wproj, bproj
                const((inner, D)), const((1, D)),                # Wffo, bffo
            ],
            out_specs=pl.BlockSpec((N, D), lambda b: (b, 0)),
        ),
        compiler_params=pltpu.CompilerParams(
            dimension_semantics=("parallel",),   # megacore sharding on v7x
            vmem_limit_bytes=32 * 1024 * 1024),
        cost_estimate=pl.CostEstimate(
            flops=int(flops), transcendentals=int(transcendentals),
            bytes_accessed=bytes_accessed),
    )(x2d, kp['g1'], kp['b1'], kp['wq'], kp['wk'], kp['wv'], kp['wout'],
      kp['g2'], kp['b2'], kp['wproj'], kp['bproj'], kp['wffo'], kp['bffo'])

    return out2d.reshape(B, N, D)


def transformer_block_ref(x, params, *, num_heads, dim_heads):
    """Pure-JAX f32 reference with torch semantics (dense weights)."""
    B, N, D = x.shape
    xn = _layernorm(x, params['g1'][0], params['b1'][0])
    qkv = xn @ params['wqkv']
    q, k, v = jnp.split(qkv, 3, axis=-1)
    q = q.reshape(B, N, num_heads, dim_heads).transpose(0, 2, 1, 3)
    k = k.reshape(B, N, num_heads, dim_heads).transpose(0, 2, 1, 3)
    v = v.reshape(B, N, num_heads, dim_heads).transpose(0, 2, 1, 3)
    scale = 1.0 / (dim_heads ** 0.5)
    dots = jnp.einsum('bhid,bhjd->bhij', q, k) * scale
    attn = jax.nn.softmax(dots, axis=-1)
    out = jnp.einsum('bhij,bhjd->bhid', attn, v)
    out = out.transpose(0, 2, 1, 3).reshape(B, N, D)
    x1 = x + out @ params['wout']
    xn2 = _layernorm(x1, params['g2'][0], params['b2'][0])
    y = xn2 @ params['wproj'] + params['bproj'][0]
    inner = params['wffo'].shape[0]
    a, gate = y[..., :inner], y[..., inner:]
    h = a * (gate * jax.nn.sigmoid(gate))
    return x1 + h @ params['wffo'] + params['bffo'][0]


if __name__ == "__main__":
    # Small lane-dense shapes: dim=128, dim_heads=64 (module default) -> 2 heads;
    # batch=2, seq=16, FeedForward mult=4 -> inner=512.
    B, N, D = 2, 16, 128
    dim_heads = 64
    num_heads = D // dim_heads
    inner = D * 4

    key = jax.random.PRNGKey(0)
    ks = jax.random.split(key, 8)
    s = 0.05  # small deterministic init scale

    params = {
        'g1': jnp.ones((1, D), jnp.float32),            # LayerNorm gamma (ones)
        'b1': jnp.zeros((1, D), jnp.float32),           # LayerNorm beta buffer
        'wqkv': jax.random.normal(ks[0], (D, 3 * D), jnp.float32) * s,
        'wout': jax.random.normal(ks[1], (D, D), jnp.float32) * s,   # zero-init skipped
        'g2': jnp.ones((1, D), jnp.float32),
        'b2': jnp.zeros((1, D), jnp.float32),
        'wproj': jax.random.normal(ks[2], (D, 2 * inner), jnp.float32) * s,
        'bproj': jax.random.normal(ks[3], (1, 2 * inner), jnp.float32) * s,
        'wffo': jax.random.normal(ks[4], (inner, D), jnp.float32) * s,  # zero-init skipped
        'bffo': jax.random.normal(ks[5], (1, D), jnp.float32) * s,
    }
    x = jax.random.normal(ks[6], (B, N, D), jnp.float32)

    out = transformer_block(x, params, num_heads=num_heads, dim_heads=dim_heads)
    out = jax.block_until_ready(out)

    ref = transformer_block_ref(x, params, num_heads=num_heads, dim_heads=dim_heads)
    # bf16 MXU operands + approx reciprocal -> looser tolerance than the f32 path.
    np.testing.assert_allclose(np.asarray(out), np.asarray(ref), rtol=2e-2, atol=2e-2)

    print("KERNEL_OK")
</pallas_src>

<mosaic_0001>
module attributes {stable_mosaic.version = 11 : i64} {
  func.func @transformer_block_kernel(%arg0: i32, %arg1: memref<16x128xf32, #tpu.memory_space<vmem>>, %arg2: memref<1x128xf32, #tpu.memory_space<vmem>>, %arg3: memref<1x128xf32, #tpu.memory_space<vmem>>, %arg4: memref<2x128x64xbf16, #tpu.memory_space<vmem>>, %arg5: memref<2x128x64xbf16, #tpu.memory_space<vmem>>, %arg6: memref<2x128x64xbf16, #tpu.memory_space<vmem>>, %arg7: memref<2x64x128xbf16, #tpu.memory_space<vmem>>, %arg8: memref<1x128xf32, #tpu.memory_space<vmem>>, %arg9: memref<1x128xf32, #tpu.memory_space<vmem>>, %arg10: memref<128x1024xbf16, #tpu.memory_space<vmem>>, %arg11: memref<1x1024xf32, #tpu.memory_space<vmem>>, %arg12: memref<512x128xbf16, #tpu.memory_space<vmem>>, %arg13: memref<1x128xf32, #tpu.memory_space<vmem>>, %arg14: memref<16x128xf32, #tpu.memory_space<vmem>>) attributes {dimension_semantics = [#tpu.dimension_semantics<parallel>], iteration_bounds = array<i64: 2>, scalar_prefetch = 0 : i64, scratch_operands = 0 : i64, tpu.core_type = #tpu.core_type<tc>, window_params = [{transform_indices = @transform_0, window_bounds = array<i64: 16, 128>}, {pipeline_mode = #tpu.pipeline_mode<synchronous>, transform_indices = @transform_1, window_bounds = array<i64: 1, 128>}, {pipeline_mode = #tpu.pipeline_mode<synchronous>, transform_indices = @transform_2, window_bounds = array<i64: 1, 128>}, {pipeline_mode = #tpu.pipeline_mode<synchronous>, transform_indices = @transform_3, window_bounds = array<i64: 2, 128, 64>}, {pipeline_mode = #tpu.pipeline_mode<synchronous>, transform_indices = @transform_4, window_bounds = array<i64: 2, 128, 64>}, {pipeline_mode = #tpu.pipeline_mode<synchronous>, transform_indices = @transform_5, window_bounds = array<i64: 2, 128, 64>}, {pipeline_mode = #tpu.pipeline_mode<synchronous>, transform_indices = @transform_6, window_bounds = array<i64: 2, 64, 128>}, {pipeline_mode = #tpu.pipeline_mode<synchronous>, transform_indices = @transform_7, window_bounds = array<i64: 1, 128>}, {pipeline_mode = #tpu.pipeline_mode<synchronous>, transform_indices = @transform_8, window_bounds = array<i64: 1, 128>}, {pipeline_mode = #tpu.pipeline_mode<synchronous>, transform_indices = @transform_9, window_bounds = array<i64: 128, 1024>}, {pipeline_mode = #tpu.pipeline_mode<synchronous>, transform_indices = @transform_10, window_bounds = array<i64: 1, 1024>}, {pipeline_mode = #tpu.pipeline_mode<synchronous>, transform_indices = @transform_11, window_bounds = array<i64: 512, 128>}, {pipeline_mode = #tpu.pipeline_mode<synchronous>, transform_indices = @transform_12, window_bounds = array<i64: 1, 128>}, {transform_indices = @transform_13, window_bounds = array<i64: 16, 128>}]} {
    %c0 = arith.constant 0 : index
    %c0_0 = arith.constant 0 : index
    %0 = vector.load %arg1[%c0, %c0_0] : memref<16x128xf32, #tpu.memory_space<vmem>>, vector<16x128xf32>
    %c0_1 = arith.constant 0 : index
    %c0_2 = arith.constant 0 : index
    %1 = vector.load %arg2[%c0_1, %c0_2] : memref<1x128xf32, #tpu.memory_space<vmem>>, vector<1x128xf32>
    %2 = vector.shape_cast %1 : vector<1x128xf32> to vector<128xf32>
    %c0_3 = arith.constant 0 : index
    %c0_4 = arith.constant 0 : index
    %3 = vector.load %arg3[%c0_3, %c0_4] : memref<1x128xf32, #tpu.memory_space<vmem>>, vector<1x128xf32>
    %4 = vector.shape_cast %3 : vector<1x128xf32> to vector<128xf32>
    %cst = arith.constant dense<0.000000e+00> : vector<16xf32>
    %5 = vector.multi_reduction <add>, %0, %cst [1] : vector<16x128xf32> to vector<16xf32>
    %6 = vector.shape_cast %5 : vector<16xf32> to vector<16x1xf32>
    %cst_5 = arith.constant 1.280000e+02 : f32
    %7 = vector.broadcast %cst_5 : f32 to vector<16x1xf32>
    %8 = arith.divf %6, %7 : vector<16x1xf32>
    %9 = vector.broadcast %8 : vector<16x1xf32> to vector<16x128xf32>
    %10 = arith.subf %0, %9 : vector<16x128xf32>
    %11 = arith.mulf %10, %10 : vector<16x128xf32>
    %cst_6 = arith.constant dense<0.000000e+00> : vector<16xf32>
    %12 = vector.multi_reduction <add>, %11, %cst_6 [1] : vector<16x128xf32> to vector<16xf32>
    %13 = vector.shape_cast %12 : vector<16xf32> to vector<16x1xf32>
    %cst_7 = arith.constant 1.280000e+02 : f32
    %14 = vector.broadcast %cst_7 : f32 to vector<16x1xf32>
    %15 = arith.divf %13, %14 : vector<16x1xf32>
    %16 = vector.broadcast %8 : vector<16x1xf32> to vector<16x128xf32>
    %17 = arith.subf %0, %16 : vector<16x128xf32>
    %cst_8 = arith.constant 9.99999974E-6 : f32
    %18 = vector.broadcast %cst_8 : f32 to vector<16x1xf32>
    %19 = arith.addf %15, %18 : vector<16x1xf32>
    %20 = math.rsqrt %19 : vector<16x1xf32>
    %21 = vector.broadcast %20 : vector<16x1xf32> to vector<16x128xf32>
    %22 = arith.mulf %17, %21 : vector<16x128xf32>
    %23 = vector.shape_cast %2 : vector<128xf32> to vector<1x128xf32>
    %24 = vector.broadcast %23 : vector<1x128xf32> to vector<16x128xf32>
    %25 = arith.mulf %22, %24 : vector<16x128xf32>
    %26 = vector.shape_cast %4 : vector<128xf32> to vector<1x128xf32>
    %27 = vector.broadcast %26 : vector<1x128xf32> to vector<16x128xf32>
    %28 = arith.addf %25, %27 : vector<16x128xf32>
    %29 = arith.truncf %28 : vector<16x128xf32> to vector<16x128xbf16>
    %cst_9 = arith.constant 0.000000e+00 : f32
    %30 = vector.broadcast %cst_9 : f32 to vector<16x128xf32>
    %c0_i32 = arith.constant 0 : i32
    %31 = arith.index_cast %c0_i32 : i32 to index
    %c0_10 = arith.constant 0 : index
    %c0_11 = arith.constant 0 : index
    %32 = vector.load %arg4[%31, %c0_10, %c0_11] : memref<2x128x64xbf16, #tpu.memory_space<vmem>>, vector<1x128x64xbf16>
    %33 = vector.shape_cast %32 : vector<1x128x64xbf16> to vector<128x64xbf16>
    %cst_12 = arith.constant dense<0.000000e+00> : vector<16x64xf32>
    %34 = tpu.matmul %29, %33, %cst_12 {dimension_numbers = #tpu.dot_dimension_numbers<[1], [0], [0], [1], [0, 0, 1, 1], [], []>} : vector<16x128xbf16>, vector<128x64xbf16>, vector<16x64xf32> -> vector<16x64xf32>
    %35 = arith.index_cast %c0_i32 : i32 to index
    %c0_13 = arith.constant 0 : index
    %c0_14 = arith.constant 0 : index
    %36 = vector.load %arg5[%35, %c0_13, %c0_14] : memref<2x128x64xbf16, #tpu.memory_space<vmem>>, vector<1x128x64xbf16>
    %37 = vector.shape_cast %36 : vector<1x128x64xbf16> to vector<128x64xbf16>
    %cst_15 = arith.constant dense<0.000000e+00> : vector<16x64xf32>
    %38 = tpu.matmul %29, %37, %cst_15 {dimension_numbers = #tpu.dot_dimension_numbers<[1], [0], [0], [1], [0, 0, 1, 1], [], []>} : vector<16x128xbf16>, vector<128x64xbf16>, vector<16x64xf32> -> vector<16x64xf32>
    %39 = arith.index_cast %c0_i32 : i32 to index
    %c0_16 = arith.constant 0 : index
    %c0_17 = arith.constant 0 : index
    %40 = vector.load %arg6[%39, %c0_16, %c0_17] : memref<2x128x64xbf16, #tpu.memory_space<vmem>>, vector<1x128x64xbf16>
    %41 = vector.shape_cast %40 : vector<1x128x64xbf16> to vector<128x64xbf16>
    %cst_18 = arith.constant dense<0.000000e+00> : vector<16x64xf32>
    %42 = tpu.matmul %29, %41, %cst_18 {dimension_numbers = #tpu.dot_dimension_numbers<[1], [0], [0], [1], [0, 0, 1, 1], [], []>} : vector<16x128xbf16>, vector<128x64xbf16>, vector<16x64xf32> -> vector<16x64xf32>
    %43 = arith.truncf %34 : vector<16x64xf32> to vector<16x64xbf16>
    %44 = arith.truncf %38 : vector<16x64xf32> to vector<16x64xbf16>
    %cst_19 = arith.constant dense<0.000000e+00> : vector<16x16xf32>
    %45 = tpu.matmul %43, %44, %cst_19 {dimension_numbers = #tpu.dot_dimension_numbers<[1], [1], [0], [0], [0, 0, 1, 0], [], []>} : vector<16x64xbf16>, vector<16x64xbf16>, vector<16x16xf32> -> vector<16x16xf32>
    %cst_20 = arith.constant dense<0xFF800000> : vector<16xf32>
    %46 = vector.multi_reduction <maximumf>, %45, %cst_20 [1] : vector<16x16xf32> to vector<16xf32>
    %47 = vector.shape_cast %46 : vector<16xf32> to vector<16x1xf32>
    %48 = vector.broadcast %47 : vector<16x1xf32> to vector<16x16xf32>
    %49 = arith.subf %45, %48 : vector<16x16xf32>
    %50 = math.exp %49 : vector<16x16xf32>
    %cst_21 = arith.constant dense<0.000000e+00> : vector<16xf32>
    %51 = vector.multi_reduction <add>, %50, %cst_21 [1] : vector<16x16xf32> to vector<16xf32>
    %52 = vector.shape_cast %51 : vector<16xf32> to vector<16x1xf32>
    %53 = arith.truncf %50 : vector<16x16xf32> to vector<16x16xbf16>
    %54 = arith.truncf %42 : vector<16x64xf32> to vector<16x64xbf16>
    %cst_22 = arith.constant dense<0.000000e+00> : vector<16x64xf32>
    %55 = tpu.matmul %53, %54, %cst_22 {dimension_numbers = #tpu.dot_dimension_numbers<[1], [0], [0], [1], [0, 0, 1, 1], [], []>} : vector<16x16xbf16>, vector<16x64xbf16>, vector<16x64xf32> -> vector<16x64xf32>
    %56 = tpu.reciprocal %52 {approx = true} : vector<16x1xf32> -> vector<16x1xf32>
    %57 = vector.broadcast %56 : vector<16x1xf32> to vector<16x64xf32>
    %58 = arith.mulf %55, %57 : vector<16x64xf32>
    %59 = arith.truncf %58 : vector<16x64xf32> to vector<16x64xbf16>
    %60 = arith.index_cast %c0_i32 : i32 to index
    %c0_23 = arith.constant 0 : index
    %c0_24 = arith.constant 0 : index
    %61 = vector.load %arg7[%60, %c0_23, %c0_24] : memref<2x64x128xbf16, #tpu.memory_space<vmem>>, vector<1x64x128xbf16>
    %62 = vector.shape_cast %61 : vector<1x64x128xbf16> to vector<64x128xbf16>
    %cst_25 = arith.constant dense<0.000000e+00> : vector<16x128xf32>
    %63 = tpu.matmul %59, %62, %cst_25 {dimension_numbers = #tpu.dot_dimension_numbers<[1], [0], [0], [1], [0, 0, 1, 1], [], []>} : vector<16x64xbf16>, vector<64x128xbf16>, vector<16x128xf32> -> vector<16x128xf32>
    %64 = arith.addf %30, %63 : vector<16x128xf32>
    %c1_i32 = arith.constant 1 : i32
    %65 = arith.index_cast %c1_i32 : i32 to index
    %c0_26 = arith.constant 0 : index
    %c0_27 = arith.constant 0 : index
    %66 = vector.load %arg4[%65, %c0_26, %c0_27] : memref<2x128x64xbf16, #tpu.memory_space<vmem>>, vector<1x128x64xbf16>
    %67 = vector.shape_cast %66 : vector<1x128x64xbf16> to vector<128x64xbf16>
    %cst_28 = arith.constant dense<0.000000e+00> : vector<16x64xf32>
    %68 = tpu.matmul %29, %67, %cst_28 {dimension_numbers = #tpu.dot_dimension_numbers<[1], [0], [0], [1], [0, 0, 1, 1], [], []>} : vector<16x128xbf16>, vector<128x64xbf16>, vector<16x64xf32> -> vector<16x64xf32>
    %69 = arith.index_cast %c1_i32 : i32 to index
    %c0_29 = arith.constant 0 : index
    %c0_30 = arith.constant 0 : index
    %70 = vector.load %arg5[%69, %c0_29, %c0_30] : memref<2x128x64xbf16, #tpu.memory_space<vmem>>, vector<1x128x64xbf16>
    %71 = vector.shape_cast %70 : vector<1x128x64xbf16> to vector<128x64xbf16>
    %cst_31 = arith.constant dense<0.000000e+00> : vector<16x64xf32>
    %72 = tpu.matmul %29, %71, %cst_31 {dimension_numbers = #tpu.dot_dimension_numbers<[1], [0], [0], [1], [0, 0, 1, 1], [], []>} : vector<16x128xbf16>, vector<128x64xbf16>, vector<16x64xf32> -> vector<16x64xf32>
    %73 = arith.index_cast %c1_i32 : i32 to index
    %c0_32 = arith.constant 0 : index
    %c0_33 = arith.constant 0 : index
    %74 = vector.load %arg6[%73, %c0_32, %c0_33] : memref<2x128x64xbf16, #tpu.memory_space<vmem>>, vector<1x128x64xbf16>
    %75 = vector.shape_cast %74 : vector<1x128x64xbf16> to vector<128x64xbf16>
    %cst_34 = arith.constant dense<0.000000e+00> : vector<16x64xf32>
    %76 = tpu.matmul %29, %75, %cst_34 {dimension_numbers = #tpu.dot_dimension_numbers<[1], [0], [0], [1], [0, 0, 1, 1], [], []>} : vector<16x128xbf16>, vector<128x64xbf16>, vector<16x64xf32> -> vector<16x64xf32>
    %77 = arith.truncf %68 : vector<16x64xf32> to vector<16x64xbf16>
    %78 = arith.truncf %72 : vector<16x64xf32> to vector<16x64xbf16>
    %cst_35 = arith.constant dense<0.000000e+00> : vector<16x16xf32>
    %79 = tpu.matmul %77, %78, %cst_35 {dimension_numbers = #tpu.dot_dimension_numbers<[1], [1], [0], [0], [0, 0, 1, 0], [], []>} : vector<16x64xbf16>, vector<16x64xbf16>, vector<16x16xf32> -> vector<16x16xf32>
    %cst_36 = arith.constant dense<0xFF800000> : vector<16xf32>
    %80 = vector.multi_reduction <maximumf>, %79, %cst_36 [1] : vector<16x16xf32> to vector<16xf32>
    %81 = vector.shape_cast %80 : vector<16xf32> to vector<16x1xf32>
    %82 = vector.broadcast %81 : vector<16x1xf32> to vector<16x16xf32>
    %83 = arith.subf %79, %82 : vector<16x16xf32>
    %84 = math.exp %83 : vector<16x16xf32>
    %cst_37 = arith.constant dense<0.000000e+00> : vector<16xf32>
    %85 = vector.multi_reduction <add>, %84, %cst_37 [1] : vector<16x16xf32> to vector<16xf32>
    %86 = vector.shape_cast %85 : vector<16xf32> to vector<16x1xf32>
    %87 = arith.truncf %84 : vector<16x16xf32> to vector<16x16xbf16>
    %88 = arith.truncf %76 : vector<16x64xf32> to vector<16x64xbf16>
    %cst_38 = arith.constant dense<0.000000e+00> : vector<16x64xf32>
    %89 = tpu.matmul %87, %88, %cst_38 {dimension_numbers = #tpu.dot_dimension_numbers<[1], [0], [0], [1], [0, 0, 1, 1], [], []>} : vector<16x16xbf16>, vector<16x64xbf16>, vector<16x64xf32> -> vector<16x64xf32>
    %90 = tpu.reciprocal %86 {approx = true} : vector<16x1xf32> -> vector<16x1xf32>
    %91 = vector.broadcast %90 : vector<16x1xf32> to vector<16x64xf32>
    %92 = arith.mulf %89, %91 : vector<16x64xf32>
    %93 = arith.truncf %92 : vector<16x64xf32> to vector<16x64xbf16>
    %94 = arith.index_cast %c1_i32 : i32 to index
    %c0_39 = arith.constant 0 : index
    %c0_40 = arith.constant 0 : index
    %95 = vector.load %arg7[%94, %c0_39, %c0_40] : memref<2x64x128xbf16, #tpu.memory_space<vmem>>, vector<1x64x128xbf16>
    %96 = vector.shape_cast %95 : vector<1x64x128xbf16> to vector<64x128xbf16>
    %cst_41 = arith.constant dense<0.000000e+00> : vector<16x128xf32>
    %97 = tpu.matmul %93, %96, %cst_41 {dimension_numbers = #tpu.dot_dimension_numbers<[1], [0], [0], [1], [0, 0, 1, 1], [], []>} : vector<16x64xbf16>, vector<64x128xbf16>, vector<16x128xf32> -> vector<16x128xf32>
    %98 = arith.addf %64, %97 : vector<16x128xf32>
    %c2_i32 = arith.constant 2 : i32
    %99 = arith.addf %0, %98 : vector<16x128xf32>
    %c0_42 = arith.constant 0 : index
    %c0_43 = arith.constant 0 : index
    %100 = vector.load %arg8[%c0_42, %c0_43] : memref<1x128xf32, #tpu.memory_space<vmem>>, vector<1x128xf32>
    %101 = vector.shape_cast %100 : vector<1x128xf32> to vector<128xf32>
    %c0_44 = arith.constant 0 : index
    %c0_45 = arith.constant 0 : index
    %102 = vector.load %arg9[%c0_44, %c0_45] : memref<1x128xf32, #tpu.memory_space<vmem>>, vector<1x128xf32>
    %103 = vector.shape_cast %102 : vector<1x128xf32> to vector<128xf32>
    %cst_46 = arith.constant dense<0.000000e+00> : vector<16xf32>
    %104 = vector.multi_reduction <add>, %99, %cst_46 [1] : vector<16x128xf32> to vector<16xf32>
    %105 = vector.shape_cast %104 : vector<16xf32> to vector<16x1xf32>
    %cst_47 = arith.constant 1.280000e+02 : f32
    %106 = vector.broadcast %cst_47 : f32 to vector<16x1xf32>
    %107 = arith.divf %105, %106 : vector<16x1xf32>
    %108 = vector.broadcast %107 : vector<16x1xf32> to vector<16x128xf32>
    %109 = arith.subf %99, %108 : vector<16x128xf32>
    %110 = arith.mulf %109, %109 : vector<16x128xf32>
    %cst_48 = arith.constant dense<0.000000e+00> : vector<16xf32>
    %111 = vector.multi_reduction <add>, %110, %cst_48 [1] : vector<16x128xf32> to vector<16xf32>
    %112 = vector.shape_cast %111 : vector<16xf32> to vector<16x1xf32>
    %cst_49 = arith.constant 1.280000e+02 : f32
    %113 = vector.broadcast %cst_49 : f32 to vector<16x1xf32>
    %114 = arith.divf %112, %113 : vector<16x1xf32>
    %115 = vector.broadcast %107 : vector<16x1xf32> to vector<16x128xf32>
    %116 = arith.subf %99, %115 : vector<16x128xf32>
    %cst_50 = arith.constant 9.99999974E-6 : f32
    %117 = vector.broadcast %cst_50 : f32 to vector<16x1xf32>
    %118 = arith.addf %114, %117 : vector<16x1xf32>
    %119 = math.rsqrt %118 : vector<16x1xf32>
    %120 = vector.broadcast %119 : vector<16x1xf32> to vector<16x128xf32>
    %121 = arith.mulf %116, %120 : vector<16x128xf32>
    %122 = vector.shape_cast %101 : vector<128xf32> to vector<1x128xf32>
    %123 = vector.broadcast %122 : vector<1x128xf32> to vector<16x128xf32>
    %124 = arith.mulf %121, %123 : vector<16x128xf32>
    %125 = vector.shape_cast %103 : vector<128xf32> to vector<1x128xf32>
    %126 = vector.broadcast %125 : vector<1x128xf32> to vector<16x128xf32>
    %127 = arith.addf %124, %126 : vector<16x128xf32>
    %128 = arith.truncf %127 : vector<16x128xf32> to vector<16x128xbf16>
    %c0_51 = arith.constant 0 : index
    %c0_52 = arith.constant 0 : index
    %129 = vector.load %arg10[%c0_51, %c0_52] : memref<128x1024xbf16, #tpu.memory_space<vmem>>, vector<128x1024xbf16>
    %cst_53 = arith.constant dense<0.000000e+00> : vector<16x1024xf32>
    %130 = tpu.matmul %128, %129, %cst_53 {dimension_numbers = #tpu.dot_dimension_numbers<[1], [0], [0], [1], [0, 0, 1, 1], [], []>} : vector<16x128xbf16>, vector<128x1024xbf16>, vector<16x1024xf32> -> vector<16x1024xf32>
    %c0_54 = arith.constant 0 : index
    %c0_55 = arith.constant 0 : index
    %131 = vector.load %arg11[%c0_54, %c0_55] : memref<1x1024xf32, #tpu.memory_space<vmem>>, vector<1x1024xf32>
    %132 = vector.shape_cast %131 : vector<1x1024xf32> to vector<1024xf32>
    %133 = vector.shape_cast %132 : vector<1024xf32> to vector<1x1024xf32>
    %134 = vector.broadcast %133 : vector<1x1024xf32> to vector<16x1024xf32>
    %135 = arith.addf %130, %134 : vector<16x1024xf32>
    %136 = vector.extract_strided_slice %135 {offsets = [0, 0], sizes = [16, 512], strides = [1, 1]} : vector<16x1024xf32> to vector<16x512xf32>
    %137 = vector.extract_strided_slice %135 {offsets = [0, 512], sizes = [16, 512], strides = [1, 1]} : vector<16x1024xf32> to vector<16x512xf32>
    %138 = arith.negf %137 : vector<16x512xf32>
    %139 = math.exp %138 : vector<16x512xf32>
    %cst_56 = arith.constant 1.000000e+00 : f32
    %140 = vector.broadcast %cst_56 : f32 to vector<16x512xf32>
    %141 = arith.addf %140, %139 : vector<16x512xf32>
    %142 = arith.divf %140, %141 : vector<16x512xf32>
    %143 = arith.mulf %137, %142 : vector<16x512xf32>
    %144 = arith.mulf %136, %143 : vector<16x512xf32>
    %145 = arith.truncf %144 : vector<16x512xf32> to vector<16x512xbf16>
    %c0_57 = arith.constant 0 : index
    %c0_58 = arith.constant 0 : index
    %146 = vector.load %arg12[%c0_57, %c0_58] : memref<512x128xbf16, #tpu.memory_space<vmem>>, vector<512x128xbf16>
    %cst_59 = arith.constant dense<0.000000e+00> : vector<16x128xf32>
    %147 = tpu.matmul %145, %146, %cst_59 {dimension_numbers = #tpu.dot_dimension_numbers<[1], [0], [0], [1], [0, 0, 1, 1], [], []>} : vector<16x512xbf16>, vector<512x128xbf16>, vector<16x128xf32> -> vector<16x128xf32>
    %c0_60 = arith.constant 0 : index
    %c0_61 = arith.constant 0 : index
    %148 = vector.load %arg13[%c0_60, %c0_61] : memref<1x128xf32, #tpu.memory_space<vmem>>, vector<1x128xf32>
    %149 = vector.shape_cast %148 : vector<1x128xf32> to vector<128xf32>
    %150 = vector.shape_cast %149 : vector<128xf32> to vector<1x128xf32>
    %151 = vector.broadcast %150 : vector<1x128xf32> to vector<16x128xf32>
    %152 = arith.addf %147, %151 : vector<16x128xf32>
    %153 = arith.addf %99, %152 : vector<16x128xf32>
    %c0_62 = arith.constant 0 : index
    %c0_63 = arith.constant 0 : index
    %154 = vector.load %arg14[%c0_62, %c0_63] : memref<16x128xf32, #tpu.memory_space<vmem>>, vector<16x128xf32>
    tpu.vector_store %arg14[%c0_62, %c0_63], %153 {strides = array<i32>} : memref<16x128xf32, #tpu.memory_space<vmem>>, vector<16x128xf32>,
    return
  }
  func.func @transform_0(%arg0: i32) -> (i32, i32) {
    %c0_i32 = arith.constant 0 : i32
    %c0_i32_0 = arith.constant 0 : i32
    return %arg0, %c0_i32 : i32, i32
  }
  func.func @transform_1(%arg0: i32) -> (i32, i32) {
    %c0_i32 = arith.constant 0 : i32
    %c0_i32_0 = arith.constant 0 : i32
    %c0_i32_1 = arith.constant 0 : i32
    return %c0_i32, %c0_i32_0 : i32, i32
  }
  func.func @transform_2(%arg0: i32) -> (i32, i32) {
    %c0_i32 = arith.constant 0 : i32
    %c0_i32_0 = arith.constant 0 : i32
    %c0_i32_1 = arith.constant 0 : i32
    return %c0_i32, %c0_i32_0 : i32, i32
  }
  func.func @transform_3(%arg0: i32) -> (i32, i32, i32) {
    %c0_i32 = arith.constant 0 : i32
    %c0_i32_0 = arith.constant 0 : i32
    %c0_i32_1 = arith.constant 0 : i32
    %c0_i32_2 = arith.constant 0 : i32
    return %c0_i32, %c0_i32_0, %c0_i32_1 : i32, i32, i32
  }
  func.func @transform_4(%arg0: i32) -> (i32, i32, i32) {
    %c0_i32 = arith.constant 0 : i32
    %c0_i32_0 = arith.constant 0 : i32
    %c0_i32_1 = arith.constant 0 : i32
    %c0_i32_2 = arith.constant 0 : i32
    return %c0_i32, %c0_i32_0, %c0_i32_1 : i32, i32, i32
  }
  func.func @transform_5(%arg0: i32) -> (i32, i32, i32) {
    %c0_i32 = arith.constant 0 : i32
    %c0_i32_0 = arith.constant 0 : i32
    %c0_i32_1 = arith.constant 0 : i32
    %c0_i32_2 = arith.constant 0 : i32
    return %c0_i32, %c0_i32_0, %c0_i32_1 : i32, i32, i32
  }
  func.func @transform_6(%arg0: i32) -> (i32, i32, i32) {
    %c0_i32 = arith.constant 0 : i32
    %c0_i32_0 = arith.constant 0 : i32
    %c0_i32_1 = arith.constant 0 : i32
    %c0_i32_2 = arith.constant 0 : i32
    return %c0_i32, %c0_i32_0, %c0_i32_1 : i32, i32, i32
  }
  func.func @transform_7(%arg0: i32) -> (i32, i32) {
    %c0_i32 = arith.constant 0 : i32
    %c0_i32_0 = arith.constant 0 : i32
    %c0_i32_1 = arith.constant 0 : i32
    return %c0_i32, %c0_i32_0 : i32, i32
  }
  func.func @transform_8(%arg0: i32) -> (i32, i32) {
    %c0_i32 = arith.constant 0 : i32
    %c0_i32_0 = arith.constant 0 : i32
    %c0_i32_1 = arith.constant 0 : i32
    return %c0_i32, %c0_i32_0 : i32, i32
  }
  func.func @transform_9(%arg0: i32) -> (i32, i32) {
    %c0_i32 = arith.constant 0 : i32
    %c0_i32_0 = arith.constant 0 : i32
    %c0_i32_1 = arith.constant 0 : i32
    return %c0_i32, %c0_i32_0 : i32, i32
  }
  func.func @transform_10(%arg0: i32) -> (i32, i32) {
    %c0_i32 = arith.constant 0 : i32
    %c0_i32_0 = arith.constant 0 : i32
    %c0_i32_1 = arith.constant 0 : i32
    return %c0_i32, %c0_i32_0 : i32, i32
  }
  func.func @transform_11(%arg0: i32) -> (i32, i32) {
    %c0_i32 = arith.constant 0 : i32
    %c0_i32_0 = arith.constant 0 : i32
    %c0_i32_1 = arith.constant 0 : i32
    return %c0_i32, %c0_i32_0 : i32, i32
  }
  func.func @transform_12(%arg0: i32) -> (i32, i32) {
    %c0_i32 = arith.constant 0 : i32
    %c0_i32_0 = arith.constant 0 : i32
    %c0_i32_1 = arith.constant 0 : i32
    return %c0_i32, %c0_i32_0 : i32, i32
  }
  func.func @transform_13(%arg0: i32) -> (i32, i32) {
    %c0_i32 = arith.constant 0 : i32
    %c0_i32_0 = arith.constant 0 : i32
    return %arg0, %c0_i32 : i32, i32
  }
}

</mosaic_0001>

<bundles_post_ra>
// kernel: tpu_custom_call.1
= control target key start
LH: loop header
LB: loop body
LE: loop exit
PB: predicated region body
PF: predicated region fallthrough
CT: control target
= control target key end

     0   :  { %s4589_s0 = inlined_call_operand.vmem [shape: f32[32,128], index: 0, kind: input, shape index: {}]   ;;  %s4590_s1 = inlined_call_operand.vmem [shape: f32[1,128], index: 1, kind: input, shape index: {}]   ;;  %s4591_s2 = inlined_call_operand.vmem [shape: f32[1,128], index: 2, kind: input, shape index: {}]   ;;  %s4592_s3 = inlined_call_operand.vmem [shape: bf16[2,128,64], index: 3, kind: input, shape index: {}]   ;;  %s4593_s4 = inlined_call_operand.vmem [shape: bf16[2,128,64], index: 4, kind: input, shape index: {}]   ;;  %s4594_s5 = inlined_call_operand.vmem [shape: bf16[2,128,64], index: 5, kind: input, shape index: {}]   ;;  %s4595_s6 = inlined_call_operand.vmem [shape: bf16[2,64,128], index: 6, kind: input, shape index: {}]   ;;  %s4596_s7 = inlined_call_operand.hbm [shape: f32[1,128], index: 7, kind: input, shape index: {}]   ;;  %s4597_s8 = inlined_call_operand.hbm [shape: f32[1,128], index: 8, kind: input, shape index: {}]   ;;  %s4598_s9 = inlined_call_operand.vmem [shape: bf16[128,1024], index: 9, kind: input, shape index: {}]   ;;  %s4599_s10 = inlined_call_operand.hbm [shape: f32[1,1024], index: 10, kind: input, shape index: {}]   ;;  %s4600_s11 = inlined_call_operand.hbm [shape: bf16[512,128], index: 11, kind: input, shape index: {}]   ;;  %s4601_s12 = inlined_call_operand.vmem [shape: f32[1,128], index: 12, kind: input, shape index: {}]   ;;  %s4602_s13 = inlined_call_operand.hbm [shape: f32[32,128], index: 13, kind: output, shape index: {}]  }
   0x1   :  { %4613 = sst [smem:[#allocation21_spill]] %s4602_s13 }
   0x2   :  { %18 = vsyncpa [#allocation3], 0 }
   0x3   :  { %19 = vsyncpa [#allocation6], 0 }
   0x4   :  { %20 = vsyncpa [#allocation9], 0 }
   0x5   :  { %21 = vsyncpa [#allocation4], 0 }
   0x6   :  { %23 = vsyncpa [#allocation4 + $0x1], 0  ;;  %s3774_s25 = smov 0   ;;  %s3776_s26 = smov 0  }
   0x7   :  { %s3778_s27 = smov 0   ;;  %s3780_s28 = smov 0  }
   0x8 LB: > { %4614 = sst [smem:[#allocation15_spill]] %s3678_s25  ;;  %s3795_s29 = sadd.s32 4294967295, %s3690_s28   ;;  %s3690_s28 = sphi %s3780_s28, %s4638_s28   ;;  %s3686_s27 = sphi %s3778_s27, %s4640_s27   ;;  %s3682_s26 = sphi %s3776_s26, %s4642_s26   ;;  %s3678_s25 = sphi %s3774_s25, %s4641_s25  }
   0x9   : > { %4615 = sst [smem:[#allocation16_spill]] %s3686_s27  ;;  %s2739_s30 = sadd.s32 4294967294, %s3690_s28  }
   0xa   : > { %4616 = sst [smem:[#allocation17_spill]] %s3690_s28  ;;  %s3799_s14 = sadd.s32 1, %s3690_s28  }
   0xb   : > { %4617 = sst [smem:[#allocation18_spill]] %s3799_s14  ;;  %s314_s15 = sadd.s32 1, %s3686_s27 }
   0xc   : > { %s311_s16 = ssub.s32 %s3690_s28, %s3799_s14  ;;  %p324_p0 = scmp.ne.s32.totalorder %s3686_s27, %s3682_s26 }
   0xd   : > { %p312_p1 = scmp.eq.s32.totalorder %s311_s16, 0  ;;  %p325_p2 = scmp.eq.s32.totalorder %s3795_s29, 1 }
   0xe   : > { %p330_p3 = scmp.ne.s32.totalorder %s3682_s26, %s3678_s25  ;;  %p331_p4 = scmp.eq.s32.totalorder %s2739_s30, 1 }
   0xf   : > { %s3810_s17 = scalar_select %p312_p1, %s3686_s27, %s314_s15  }
  0x10   : > { %p3812_p5 = por %p325_p2, %p324_p0  ;;  %p3816_p6 = por %p331_p4, %p330_p3 }
  0x11   : > { %4618 = sst [smem:[#allocation19_spill]] %s3810_s17  ;;  %p2740_p7 = scmp.ge.s32.totalorder %s3690_s28, 1 }
  0x12   : > { %s4619_s18 = scalar_select %p3812_p5, 1, 0 }
  0x13   : > { %s4620_s19 = scalar_select %p3816_p6, 1, 0 }
  0x14   : > { %p338_p8 = scmp.lt.s32.totalorder %s3690_s28, 3  ;;  %p4608_p9 = scmp.eq.s32.totalorder %s3795_s29, 0 }
  0x15   : > { %4621 = sst [smem:[#allocation20_spill]] %s4620_s19  ;;  %s3692_s21 = smov [#allocation5]  }
  0x16   : > { %p3823_p10 = pnand %p2740_p7, %p338_p8  ;;  %s380_s22 = sshll.u32 %s3692_s21, 4  ;;  %s381_s22 = int_to_ptr.vmem [resolvable:$true] %s380_s22 }
  0x17   : > { %s3693_s23 = smov [#allocation2]   ;;  %s3694_s15 = smov [#allocation7]  }
  0x18   : > { %s4622_s20 = scalar_select %p3823_p10, 1, 0 }
  0x19   : > { %p3289_p11 = pneg %p3823_p10  ;;  %s369_s24 = sshll.u32 %s3693_s23, 4  ;;  %s3835_s24 = int_to_ptr.vmem [resolvable:$true] %s369_s24 }
  0x1a   : > { %s394_s16 = sshll.u32 %s3694_s15, 4  ;;  %s3504_s21 = scalar_lea.hbm %s4597_s8, 16  ;;  %s3837_s16 = int_to_ptr.vmem [resolvable:$true] %s394_s16 }
  0x1b   : > { %p3831_p12 = pnand %p4608_p9, %p3289_p11  ;;  %p3505_p13 = scmp.ne.s32.totalorder %s4597_s8, %s3504_s21 }
  0x1c   : > { %p3511_p3 = scmp.lt.u32.totalorder %s3504_s21, %s4597_s8 }
  0x1d   : > { %p3847_p0 = pneg %p3831_p12 }
  0x1f   : > { %p3507_p1 = pnand %p3847_p0, %p3505_p13 }
  0x21   : > { %p3508_p2 = pneg %p3507_p1 }
  0x23   : > { %p3513_p4 = pnand %p3511_p3, %p3508_p2 }
  0x25   : > { %3516 = shalt.err (!%p3513_p4)
}
  0x26   : > { %s3517_s27 = scalar_lea.vmem %s381_s22, 16  ;;  %s3524_s14 = scalar_lea.vmem %s381_s22, 32 }
  0x27   : > { %p3518_p7 = scmp.ne.s32.totalorder %s381_s22, %s3517_s27  ;;  %p3525_p9 = scmp.lt.s32.totalorder %s381_s22, %s381_s22 }
  0x28   : > { %p3526_p6 = scmp.lt.s32.totalorder %s3524_s14, %s3517_s27 }
  0x29   : > { %p3520_p8 = pnand %p3518_p7, %p3847_p0 }
  0x2a   : > { %p3527_p5 = por %p3526_p6, %p3525_p9 }
  0x2b   : > { %p3521_p11 = pneg %p3520_p8 }
  0x2d   : > { %p3528_p10 = pnand %p3527_p5, %p3521_p11 }
  0x2f   : > { %3531 = shalt.err (!%p3528_p10)
}
  0x30   : > { %3295 = dma.hbm_to_vmem [thread:$0]  (!%p3831_p12), %s4597_s8, 16, %s381_s22, [#allocation6]  }
  0x31   : > { %s3532_s15 = scalar_lea.hbm %s4596_s7, 16 }
  0x32   : > { %p3533_p13 = scmp.ne.s32.totalorder %s4596_s7, %s3532_s15  ;;  %p3539_p5 = scmp.lt.u32.totalorder %s3532_s15, %s4596_s7 }
  0x34   : > { %p3535_p1 = pnand %p3533_p13, %p3847_p0 }
  0x36   : > { %p3536_p6 = pneg %p3535_p1 }
  0x38   : > { %p3541_p9 = pnand %p3539_p5, %p3536_p6 }
  0x3a   : > { %3544 = shalt.err (!%p3541_p9)
}
  0x3b   : > { %s3545_s22 = scalar_lea.vmem %s3835_s24, 16  ;;  %s3552_s13 = scalar_lea.vmem %s3835_s24, 32 }
  0x3c   : > { %p3546_p10 = scmp.ne.s32.totalorder %s3835_s24, %s3545_s22  ;;  %p3553_p4 = scmp.lt.s32.totalorder %s3835_s24, %s3835_s24 }
  0x3d   : > { %p3554_p7 = scmp.lt.s32.totalorder %s3552_s13, %s3545_s22 }
  0x3e   : > { %p3548_p2 = pnand %p3546_p10, %p3847_p0 }
  0x3f   : > { %p3555_p8 = por %p3554_p7, %p3553_p4 }
  0x40   : > { %p3549_p3 = pneg %p3548_p2 }
  0x42   : > { %p3556_p11 = pnand %p3555_p8, %p3549_p3 }
  0x44   : > { %3559 = shalt.err (!%p3556_p11)
}
  0x45   : > { %3292 = dma.hbm_to_vmem [thread:$0]  (!%p3831_p12), %s4596_s7, 16, %s3835_s24, [#allocation3]  }
  0x46   : > { %s3560_s21 = scalar_lea.hbm %s4599_s10, 128 }
  0x47   : > { %p3561_p13 = scmp.ne.s32.totalorder %s4599_s10, %s3560_s21  ;;  %p3567_p5 = scmp.lt.u32.totalorder %s3560_s21, %s4599_s10 }
  0x49   : > { %p3563_p1 = pnand %p3561_p13, %p3847_p0 }
  0x4b   : > { %p3564_p6 = pneg %p3563_p1 }
  0x4d   : > { %p3569_p9 = pnand %p3567_p5, %p3564_p6 }
  0x4f   : > { %3572 = shalt.err (!%p3569_p9)
}
  0x50   : > { %s3573_s24 = scalar_lea.vmem %s3837_s16, 128  ;;  %p3581_p4 = scmp.lt.s32.totalorder %s3837_s16, %s3837_s16 }
  0x51   : > { %p3574_p10 = scmp.ne.s32.totalorder %s3837_s16, %s3573_s24  ;;  %p3582_p7 = scmp.lt.s32.totalorder %s3573_s24, %s3573_s24 }
  0x53   : > { %p3576_p2 = pnand %p3574_p10, %p3847_p0  ;;  %p3583_p8 = por %p3582_p7, %p3581_p4 }
  0x55   : > { %p3577_p3 = pneg %p3576_p2 }
  0x57   : > { %p3584_p11 = pnand %p3583_p8, %p3577_p3 }
  0x59   : > { %3587 = shalt.err (!%p3584_p11)
}
  0x5a   : > { %3298 = dma.hbm_to_vmem [thread:$0]  (!%p3831_p12), %s4599_s10, 128, %s3837_s16, [#allocation6]  }
  0x5b   : > { %s3695_s17 = smov [#allocation8]   ;;  %s3588_s15 = scalar_lea.hbm %s4600_s11, 4096 }
  0x5c   : > { %s404_s19 = sshll.u32 %s3695_s17, 4  ;;  %p3589_p13 = scmp.ne.s32.totalorder %s4600_s11, %s3588_s15  ;;  %s405_s19 = int_to_ptr.vmem [resolvable:$true] %s404_s19 }
  0x5d   : > { %p3595_p5 = scmp.lt.u32.totalorder %s3588_s15, %s4600_s11 }
  0x5e   : > { %p3591_p1 = pnand %p3589_p13, %p3847_p0 }
  0x60   : > { %p3592_p6 = pneg %p3591_p1 }
  0x62   : > { %p3597_p9 = pnand %p3595_p5, %p3592_p6 }
  0x64   : > { %3600 = shalt.err (!%p3597_p9)
}
  0x65   : > { %s3601_s16 = scalar_lea.vmem %s405_s19, 4096  ;;  %p3609_p4 = scmp.lt.s32.totalorder %s405_s19, %s405_s19 }
  0x66   : > { %p3602_p10 = scmp.ne.s32.totalorder %s405_s19, %s3601_s16  ;;  %p3610_p7 = scmp.lt.s32.totalorder %s3601_s16, %s3601_s16 }
  0x68   : > { %p3604_p2 = pnand %p3602_p10, %p3847_p0  ;;  %p3611_p8 = por %p3610_p7, %p3609_p4 }
  0x6a   : > { %p3605_p3 = pneg %p3604_p2 }
  0x6c   : > { %p3612_p11 = pnand %p3611_p8, %p3605_p3 }
  0x6e   : > { %3615 = shalt.err (!%p3612_p11)
}
  0x6f   : > { %s3696_s13 = smov 64   ;;  %s3697_s28 = smov 4  }
  0x70   : > { %3301 = dma.hbm_to_vmem [thread:$0]  (!%p3831_p12), %s4600_s11, 4096, %s405_s19, [#allocation9], %s3696_s13, %s3696_s13, %s3697_s28  }
  0x71   : > { %p4625_p13 = scmp.ne.s32.totalorder %s4622_s20, 0 }
  0x72   : > { %p4626_p1 = scmp.eq.s32.totalorder (!%p4625_p13), %s3795_s29, 0 }
  0x73   : > { %432 = sbr.rel (%p4625_p13) target bundleno = 2946 (0xb82), region = 72 }
  0x7a   : > { %3661 = dma.done.wait (%p4626_p1), [#allocation3], 16   ;;  %p4627_p0 = pmov %p4626_p1 }
  0x7c   : > { %3663 = vsyncadd (%p4627_p0), [#allocation3], 4294967280  ;;  %p4628_p6 = pmov %p4627_p0 }
  0x7d   : > { %p4629_p5 = pmov %p4627_p0 }
  0x7e   : > { %3665 = dma.done.wait (%p4628_p6), [#allocation6], 144  }
  0x7f   : > { %3667 = vsyncadd (%p4629_p5), [#allocation6], 4294967152  ;;  %p4630_p9 = pmov %p4627_p0 }
  0x80   : > { %p4631_p12 = pmov %p4627_p0 }
  0x81   : > { %3669 = dma.done.wait (%p4630_p9), [#allocation9], 4096  }
  0x82   : > { %3671 = vsyncadd (%p4631_p12), [#allocation9], 4294963200  ;;  %s2752_s20 = sshll.u32 %s3795_s29, 1  ;;  %v3358_v2 = vld [vmem:[%s4592_s3] sm:$0xff]   ;;  %v3698_v4 = vmov 0.0   ;;  %v3360_v5 = vld [vmem:[%s4592_s3 + $0x8] sm:$0xff]  }
  0x83   : > { %p489_p10 = scmp.lt.s32.totalorder %s2752_s20, 3  ;;  %v3359_v3 = vld [vmem:[%s4593_s4] sm:$0xff]   ;;  %3103 = vmatprep.subr.bf16.mxu0 %v3698_v4  ;;  %3123 = vmatprep.subr.bf16.mxu1 %v3698_v4  ;;  %v3361_v14 = vld [vmem:[%s4593_s4 + $0x8] sm:$0xff]   ;;  %v3362_v15 = vld [vmem:[%s4592_s3 + $0x10] sm:$0xff]   ;;  %vm3699_vm0 = vmmov 0   ;;  %vm857_vm1 = vcmask 523264  }
  0x84   : > { %3104 = vmatpush3.bf16.msra.mxu0 %v3358_v2  ;;  %3124 = vmatpush3.bf16.msra.mxu1 %v3359_v3  ;;  %v3363_v16 = vld [vmem:[%s4593_s4 + $0x10] sm:$0xff]   ;;  %v3364_v17 = vld [vmem:[%s4592_s3 + $0x18] sm:$0xff]   ;;  %v3366_v19 = vld [vmem:[%s4592_s3 + $0x20] sm:$0xff]   ;;  %vm905_vm2 = vcmask 130048   ;;  %s2986_s22 = sshll.u32 %s3795_s29, 8  ;;  %s4632_s13 = sld [smem:[#allocation21_spill]] }
  0x85   : > { %s4644_s20 = smov (!%p489_p10, %s2752_s20), 3  ;;  %3105 = vmatprep.subr.bf16.mxu0 %v3698_v4  ;;  %3125 = vmatprep.subr.bf16.mxu1 %v3698_v4  ;;  %v3365_v18 = vld [vmem:[%s4593_s4 + $0x18] sm:$0xff]   ;;  %v3367_v20 = vld [vmem:[%s4593_s4 + $0x20] sm:$0xff]   ;;  %v3368_v21 = vld [vmem:[%s4592_s3 + $0x28] sm:$0xff]   ;;  %p4633_p3 = scmp.ne.s32.totalorder %s4619_s18, 0 }
  0x86   : > { %s2753_s30 = sshll.u32 %s4644_s20, 3  ;;  %v3369_v22 = vld [vmem:[%s4593_s4 + $0x28] sm:$0xff]   ;;  %v3370_v23 = vld [vmem:[%s4592_s3 + $0x30] sm:$0xff]   ;;  %v3372_v25 = vld [vmem:[%s4592_s3 + $0x38] sm:$0xff]   ;;  %3119 = vmatprep.mubr.msk.bf16.mxu0 %vm3699_vm0, %v3698_v4  ;;  %3139 = vmatprep.mubr.msk.bf16.mxu1 %vm3699_vm0, %v3698_v4  ;;  %s3701_s25 = smov [#allocation10]  }
  0x87   : > { %s3946_s21 = scalar_lea.vmem %s4589_s0, %s2753_s30  ;;  %v3371_v24 = vld [vmem:[%s4593_s4 + $0x30] sm:$0xff]   ;;  %v3373_v26 = vld [vmem:[%s4593_s4 + $0x38] sm:$0xff]   ;;  %v2754_v35 = vld [vmem:[%s4590_s1] ss:$0 sm:$0xff]  ;;  %s485_s30 = sand.u32 1, %s3682_s26  }
  0x88   : > { %v496_v0 = vld [vmem:[%s3946_s21] sm:$0xff]  ;;  %v497_v1 = vld [vmem:[%s3946_s21 + $0x8] sm:$0xff]  ;;  %3106 = vmatpush3.bf16.msra.mxu0 %v3360_v5  ;;  %3126 = vmatpush3.bf16.msra.mxu1 %v3361_v14  ;;  %v3376_v46 = vld [vmem:[%s4594_s5 + $0x10] sm:$0xff]   ;;  %s2751_s23 = sshll.u32 %s485_s30, 4  ;;  %s4548_s17 = scalar_lea.sflag [#allocation4], %s485_s30 }
  0x89   : > { %500 = vadd.xlane.f32.xlu0 %v496_v0  ;;  %3107 = vmatprep.subr.bf16.mxu0 %v3698_v4  ;;  %v2755_v39 = vld [vmem:[%s4591_s2] ss:$0 sm:$0xff]  ;;  %v3375_v45 = vld [vmem:[%s4594_s5 + $0x8] sm:$0xff]   ;;  %v3377_v47 = vld [vmem:[%s4594_s5 + $0x18] sm:$0xff]   ;;  %s487_s27 = scalar_lea.vmem [#allocation10], %s2751_s23 }
  0x8a   : > { %3127 = vmatprep.subr.bf16.mxu1 %v3698_v4  ;;  %v3374_v43 = vld [vmem:[%s4594_s5] sm:$0xff]   ;;  %v3379_v49 = vld [vmem:[%s4594_s5 + $0x28] sm:$0xff]   ;;  %v3380_v50 = vld [vmem:[%s4594_s5 + $0x30] sm:$0xff]   ;;  %s2636_s14 = sshll.u32 %s487_s27, 4  ;;  %s4546_s28 = scalar_lea.hbm %s4632_s13, %s2986_s22  ;;  %s4540_s14 = int_to_ptr.vmem [resolvable:$true] %s2636_s14 }
  0x8b   : > { %v3378_v48 = vld [vmem:[%s4594_s5 + $0x20] sm:$0xff]   ;;  %v3381_v51 = vld [vmem:[%s4594_s5 + $0x38] sm:$0xff]   ;;  %v3383_v53 = vld [vmem:[%s4593_s4 + $0x48] sm:$0xff]   ;;  %s3616_s29 = scalar_lea.vmem %s4540_s14, 256 }
  0x8c   : > { %3108 = vmatpush3.bf16.msra.mxu0 %v3362_v15  ;;  %3128 = vmatpush3.bf16.msra.mxu1 %v3363_v16  ;;  %v3382_v52 = vld [vmem:[%s4593_s4 + $0x40] sm:$0xff]   ;;  %v3384_v54 = vld [vmem:[%s4593_s4 + $0x50] sm:$0xff]   ;;  %v3385_v55 = vld [vmem:[%s4593_s4 + $0x58] sm:$0xff]   ;;  %p3617_p2 = scmp.ne.s32.totalorder %s4540_s14, %s3616_s29 }
  0x8d   : > { %502 = vadd.xlane.f32.xlu0 %v497_v1  ;;  %3109 = vmatprep.subr.bf16.mxu0 %v3698_v4  ;;  %v3386_v56 = vld [vmem:[%s4593_s4 + $0x60] sm:$0xff]   ;;  %v3387_v57 = vld [vmem:[%s4593_s4 + $0x68] sm:$0xff]   ;;  %v3388_v58 = vld [vmem:[%s4593_s4 + $0x70] sm:$0xff]  }
  0x8e   : > { %3129 = vmatprep.subr.bf16.mxu1 %v3698_v4  ;;  %v3389_v59 = vld [vmem:[%s4593_s4 + $0x78] sm:$0xff]   ;;  %p3618_p4 = pnand %p3617_p2, %p4633_p3 }
  0x90   : > { %3110 = vmatpush3.bf16.msra.mxu0 %v3364_v17  ;;  %3130 = vmatpush3.bf16.msra.mxu1 %v3365_v18  ;;  %p3619_p7 = pneg %p3618_p4 }
  0x91   : > { %3111 = vmatprep.subr.bf16.mxu0 %v3698_v4  ;;  %3131 = vmatprep.subr.bf16.mxu1 %v3698_v4 }
  0x94   : > { %3112 = vmatpush3.bf16.msra.mxu0 %v3366_v19  ;;  %3132 = vmatpush3.bf16.msra.mxu1 %v3367_v20 }
  0x95   : > { %3113 = vmatprep.subr.bf16.mxu0 %v3698_v4  ;;  %3133 = vmatprep.subr.bf16.mxu1 %v3698_v4 }
  0x98   : > { %3114 = vmatpush3.bf16.msra.mxu0 %v3368_v21  ;;  %3134 = vmatpush3.bf16.msra.mxu1 %v3369_v22 }
  0x99   : > { %3115 = vmatprep.subr.bf16.mxu0 %v3698_v4  ;;  %3135 = vmatprep.subr.bf16.mxu1 %v3698_v4 }
  0x9c   : > { %3116 = vmatpush3.bf16.msra.mxu0 %v3370_v23  ;;  %3136 = vmatpush3.bf16.msra.mxu1 %v3371_v24 }
  0x9d   : > { %3117 = vmatprep.subr.bf16.mxu0 %v3698_v4  ;;  %3137 = vmatprep.subr.bf16.mxu1 %v3698_v4 }
  0xa0   : > { %3118 = vmatpush3.bf16.msra.mxu0 %v3372_v25  ;;  %3138 = vmatpush3.bf16.msra.mxu1 %v3373_v26 }
  0xa1   : > { %3143 = vmatprep.subr.bf16.mxu0 %v3698_v4  ;;  %3163 = vmatprep.subr.bf16.mxu1 %v3698_v4 }
 0x116   : > { %v501_v6 = vpop.xlane.xlu0 %500 }
 0x117   : > { %v505_v7 = vmul.f32 0.0078125, %v501_v6 }
 0x119   : > { %v507_v8 = vsub.f32 %v496_v0, %v505_v7 }
 0x11a   : > { %v503_v9 = vpop.xlane.xlu0 %502 }
 0x11b   : > { %v506_v10 = vmul.f32 0.0078125, %v503_v9  ;;  %v509_v11 = vmul.f32 %v507_v8, %v507_v8 }
 0x11d   : > { %v508_v12 = vsub.f32 %v497_v1, %v506_v10  ;;  %511 = vadd.xlane.f32.xlu1 %v509_v11 }
 0x11f   : > { %v510_v13 = vmul.f32 %v508_v12, %v508_v12 }
 0x121   : > { %513 = vadd.xlane.f32.xlu1 %v510_v13 }
 0x1aa   : > { %v512_v27 = vpop.xlane.xlu1 %511 }
 0x1ab   : > { %v515_v28 = vmul.f32 0.0078125, %v512_v27 }
 0x1ad   : > { %v517_v29 = vadd.f32 1e-05, %v515_v28 }
 0x1ae   : > { %v514_v30 = vpop.xlane.xlu1 %513 }
 0x1af   : > { %3446 = vrsqrt.f32 %v517_v29  ;;  %v516_v31 = vmul.f32 0.0078125, %v514_v30 }
 0x1b1   : > { %v518_v32 = vadd.f32 1e-05, %v516_v31 }
 0x1b3   : > { %3448 = vrsqrt.f32 %v518_v32 }
 0x1b9   : > { %v3447_v33 = vpop.eup %3446 }
 0x1ba   : > { %v521_v34 = vmul.f32 %v3447_v33, %v507_v8  ;;  %v3390_v33 = vld [vmem:[%s4592_s3 + $0x40] sm:$0xff]  }
 0x1bc   : > { %v529_v37 = vmul.f32 %v2754_v35, %v521_v34 }
 0x1bd   : > { %v3449_v36 = vpop.eup %3448 }
 0x1be   : > { %v522_v38 = vmul.f32 %v3449_v36, %v508_v12  ;;  %v537_v41 = vadd.f32 %v2755_v39, %v529_v37  ;;  %v3392_v36 = vld [vmem:[%s4592_s3 + $0x50] sm:$0xff]   ;;  %v3393_v37 = vld [vmem:[%s4592_s3 + $0x58] sm:$0xff]  }
 0x1c0   : > { %v530_v40 = vmul.f32 %v2754_v35, %v522_v38  ;;  %v3391_v35 = vld [vmem:[%s4592_s3 + $0x48] sm:$0xff]   ;;  %v3394_v38 = vld [vmem:[%s4592_s3 + $0x60] sm:$0xff]  }
 0x1c2   : > { %v538_v42 = vadd.f32 %v2755_v39, %v530_v40  ;;  %v3395_v39 = vld [vmem:[%s4592_s3 + $0x68] sm:$0xff]   ;;  %v3396_v40 = vld [vmem:[%s4592_s3 + $0x70] sm:$0xff]  }
 0x1c4   : > { %v4029_v44 = vpack.c.bf16 %v538_v42, %v537_v41  ;;  %v3397_v41 = vld [vmem:[%s4592_s3 + $0x78] sm:$0xff]   ;;  %v3398_v42 = vld [vmem:[%s4594_s5 + $0x40] sm:$0xff]  }
 0x1c6   : > { %3120 = vmatmul.mubr.bf16.vlgmr.msra.gmra.mrb[0].mxu0 %v4029_v44  ;;  %3140 = vmatmul.mubr.bf16.vlgmr.msra.gmra.mrb[0].mxu1 %v4029_v44 }
 0x1c7   : > { %3144 = vmatpush3.bf16.msra.mxu0 %v3374_v43  ;;  %3159 = vmatprep.mubr.msk.bf16.mxu0 %vm3699_vm0, %v3698_v4  ;;  %v3399_v43 = vld [vmem:[%s4594_s5 + $0x48] sm:$0xff]  }
 0x1c8   : > { %3145 = vmatprep.subr.bf16.mxu0 %v3698_v4  ;;  %3165 = vmatprep.mubr.msk.bf16.mxu1 %vm3699_vm0, %v3698_v4 }
 0x1cb   : > { %3146 = vmatpush3.bf16.msra.mxu0 %v3375_v45  ;;  %v3400_v45 = vld [vmem:[%s4594_s5 + $0x50] sm:$0xff]  }
 0x1cc   : > { %3147 = vmatprep.subr.bf16.mxu0 %v3698_v4 }
 0x1cf   : > { %3148 = vmatpush3.bf16.msra.mxu0 %v3376_v46  ;;  %v3401_v46 = vld [vmem:[%s4594_s5 + $0x58] sm:$0xff]  }
 0x1d0   : > { %3149 = vmatprep.subr.bf16.mxu0 %v3698_v4 }
 0x1d3   : > { %3150 = vmatpush3.bf16.msra.mxu0 %v3377_v47  ;;  %v3402_v47 = vld [vmem:[%s4594_s5 + $0x60] sm:$0xff]  }
 0x1d4   : > { %3151 = vmatprep.subr.bf16.mxu0 %v3698_v4 }
 0x1d7   : > { %3152 = vmatpush3.bf16.msra.mxu0 %v3378_v48  ;;  %v3403_v48 = vld [vmem:[%s4594_s5 + $0x68] sm:$0xff]  }
 0x1d8   : > { %3153 = vmatprep.subr.bf16.mxu0 %v3698_v4 }
 0x1db   : > { %3154 = vmatpush3.bf16.msra.mxu0 %v3379_v49  ;;  %v3404_v49 = vld [vmem:[%s4594_s5 + $0x70] sm:$0xff]  }
 0x1dc   : > { %3155 = vmatprep.subr.bf16.mxu0 %v3698_v4 }
 0x1df   : > { %3156 = vmatpush3.bf16.msra.mxu0 %v3380_v50  ;;  %v3405_v50 = vld [vmem:[%s4594_s5 + $0x78] sm:$0xff]  }
 0x1e0   : > { %3157 = vmatprep.subr.bf16.mxu0 %v3698_v4 }
 0x1e3   : > { %3158 = vmatpush3.bf16.msra.mxu0 %v3381_v51 }
 0x1e4   : > { %3195 = vmatprep.subr.bf16.mxu0 %v3698_v4 }
 0x1e6   : > { %3160 = vmatmul.mubr.bf16.vlgmr.msra.gmra.mrb[4].mxu0 %v4029_v44 }
 0x1e7   : > { %3196 = vmatpush3.bf16.msra.mxu0 %v3382_v52  ;;  %3211 = vmatprep.mubr.msk.bf16.mxu0 %vm3699_vm0, %v3698_v4 }
 0x1e8   : > { %3197 = vmatprep.subr.bf16.mxu0 %v3698_v4 }
 0x1eb   : > { %3198 = vmatpush3.bf16.msra.mxu0 %v3383_v53 }
 0x1ec   : > { %3199 = vmatprep.subr.bf16.mxu0 %v3698_v4 }
 0x1ef   : > { %3200 = vmatpush3.bf16.msra.mxu0 %v3384_v54 }
 0x1f0   : > { %3201 = vmatprep.subr.bf16.mxu0 %v3698_v4 }
 0x1f3   : > { %3202 = vmatpush3.bf16.msra.mxu0 %v3385_v55 }
 0x1f4   : > { %3203 = vmatprep.subr.bf16.mxu0 %v3698_v4 }
 0x1f7   : > { %3204 = vmatpush3.bf16.msra.mxu0 %v3386_v56 }
 0x1f8   : > { %3205 = vmatprep.subr.bf16.mxu0 %v3698_v4 }
 0x1fb   : > { %3206 = vmatpush3.bf16.msra.mxu0 %v3387_v57 }
 0x1fc   : > { %3207 = vmatprep.subr.bf16.mxu0 %v3698_v4 }
 0x1ff   : > { %3208 = vmatpush3.bf16.msra.mxu0 %v3388_v58 }
 0x200   : > { %3209 = vmatprep.subr.bf16.mxu0 %v3698_v4 }
 0x203   : > { %3210 = vmatpush3.bf16.msra.mxu0 %v3389_v59 }
 0x204   : > { %3235 = vmatprep.subr.bf16.mxu0 %v3698_v4 }
 0x206   : > { %3212 = vmatmul.mubr.bf16.vlgmr.msra.gmra.mrb[8].mxu0 %v4029_v44 }
 0x207   : > { %3237 = vmatprep.mubr.msk.bf16.mxu0 %vm3699_vm0, %v3698_v4 }
 0x299   : > { %v638_v60 = vpop.f32.mrb[0].mxu0  ;;  %v743_v61 = vpop.f32.mrb[0].mxu1 }
 0x29a   : > { %v3121_v62 = vpop.f32.mrb[1].mxu0  ;;  %v3141_v63 = vpop.f32.mrb[1].mxu1 }
 0x29b   : > { %v641_v0 = vpop.f32.mrb[2].mxu0  ;;  %v746_v1 = vpop.f32.mrb[2].mxu1 }
 0x29c   : > { %v855_v2 = vpack.c.bf16 %v641_v0, %v638_v60  ;;  %v856_v3 = vpack.c.bf16 %v746_v1, %v743_v61  ;;  %v3122_v5 = vpop.f32.mrb[3].mxu0  ;;  %v3142_v6 = vpop.f32.mrb[3].mxu1 }
 0x29e   : > { %v862_v7 = vsel %vm857_vm1, %v856_v3, 0 }
 0x29f   : > { %3164 = vmatpush3.bf16.xpose.msra.mxu1 %v862_v7 }
 0x2a0   : > { %3169 = vmatprep.subr.bf16.mxu1 %v3698_v4 }
 0x2a6   : > { %3166 = vmatmul.mubr.msk.bf16.vlgmr.msra.gmra.mrb[4].mxu1 %vm857_vm1, %v855_v2 }
 0x2a7   : > { %3171 = vmatprep.mubr.msk.bf16.mxu1 %vm3699_vm0, %v3698_v4 }
 0x2b9   : > { %v848_v8 = vpop.f32.mrb[4].mxu0 }
 0x2ba   : > { %v3161_v9 = vpop.f32.mrb[5].mxu0 }
 0x2bb   : > { %v851_v10 = vpop.f32.mrb[6].mxu0  ;;  %v3406_v9 = vld [vmem:[%s4595_s6] sm:$0xff]  }
 0x2bc   : > { %v925_v11 = vpack.c.bf16 %v851_v10, %v848_v8  ;;  %v3162_v12 = vpop.f32.mrb[7].mxu0  ;;  %v3407_v10 = vld [vmem:[%s4595_s6 + $0x8] sm:$0xff]  }
 0x2bd   : > { %v3409_v12 = vld [vmem:[%s4595_s6 + $0x18] sm:$0xff]  }
 0x2be   : > { %3170 = vmatpush3.bf16.msra.mxu1 %v925_v11  ;;  %v3408_v11 = vld [vmem:[%s4595_s6 + $0x10] sm:$0xff]  }
 0x2bf   : > { %3175 = vmatprep.subr.bf16.mxu1 %v3698_v4 }
 0x2d9   : > { %v1188_v13 = vpop.f32.mrb[8].mxu0 }
 0x2da   : > { %v3213_v14 = vpop.f32.mrb[9].mxu0 }
 0x2db   : > { %v1191_v15 = vpop.f32.mrb[10].mxu0 }
 0x2dc   : > { %v1302_v16 = vpack.c.bf16 %v1191_v15, %v1188_v13  ;;  %v3214_v17 = vpop.f32.mrb[11].mxu0 }
 0x2de   : > { %v1307_v18 = vsel %vm857_vm1, %v1302_v16, 0 }
 0x2df   : > { %3236 = vmatpush3.bf16.xpose.msra.mxu0 %v1307_v18 }
 0x2e0   : > { %3241 = vmatprep.subr.bf16.mxu0 %v3698_v4 }
 0x379   : > { %v898_v19 = vpop.f32.mrb[4].mxu1 }
 0x37a   : > { %v3167_v20 = vpop.f32.mrb[5].mxu1  ;;  %v906_v21 = vsel %vm905_vm2, %v898_v19, -inf }
 0x37b   : > { %907 = vmax.xlane.f32.xlu0 %v906_v21  ;;  %v901_v22 = vpop.f32.mrb[6].mxu1 }
 0x37c   : > { %v3168_v23 = vpop.f32.mrb[7].mxu1  ;;  %v909_v24 = vsel %vm905_vm2, %v901_v22, -inf }
 0x37d   : > { %910 = vmax.xlane.f32.xlu1 %v909_v24 }
 0x408   : > { %v908_v25 = vpop.xlane.xlu0 %907 }
 0x409   : > { %v912_v26 = vsub.f32 %v898_v19, %v908_v25 }
 0x40a   : > { %v911_v27 = vpop.xlane.xlu1 %910 }
 0x40b   : > { %v914_v28 = vmul.f32 1.442695, %v912_v26  ;;  %v913_v29 = vsub.f32 %v901_v22, %v911_v27 }
 0x40d   : > { %v916_v30 = vmul.f32 1.442695, %v913_v29  ;;  %3450 = vpow2.f32 %v914_v28 }
 0x40f   : > { %3452 = vpow2.f32 %v916_v30 }
 0x417   : > { %v4114_v31 = vpop.eup %3450 }
 0x418   : > { %v918_v7 = vsel %vm905_vm2, %v4114_v31, 0.0 }
 0x419   : > { %v4116_v32 = vpop.eup %3452 }
 0x41a   : > { %v924_v34 = vpack.c.bf16 %v4116_v32, %v4114_v31  ;;  %v921_v8 = vsel %vm905_vm2, %v4116_v32, 0.0  ;;  %v3410_v31 = vld [vmem:[%s4595_s6 + $0x20] sm:$0xff]   ;;  %v3411_v32 = vld [vmem:[%s4595_s6 + $0x28] sm:$0xff]  }
 0x41c   : > { %3172 = vmatmul.mubr.msk.bf16.vlgmr.msra.gmra.mrb[8].mxu1 %vm905_vm2, %v924_v34  ;;  %v3413_v34 = vld [vmem:[%s4595_s6 + $0x38] sm:$0xff]  }
 0x41d   : > { %3176 = vmatpush3.bf16.msra.mxu1 %v3390_v33  ;;  %3191 = vmatprep.mubr.msk.bf16.mxu1 %vm3699_vm0, %v3698_v4  ;;  %v3412_v33 = vld [vmem:[%s4595_s6 + $0x30] sm:$0xff]  }
 0x41e   : > { %3177 = vmatprep.subr.bf16.mxu1 %v3698_v4 }
 0x421   : > { %3178 = vmatpush3.bf16.msra.mxu1 %v3391_v35 }
 0x422   : > { %3179 = vmatprep.subr.bf16.mxu1 %v3698_v4 }
 0x425   : > { %3180 = vmatpush3.bf16.msra.mxu1 %v3392_v36 }
 0x426   : > { %3181 = vmatprep.subr.bf16.mxu1 %v3698_v4 }
 0x429   : > { %3182 = vmatpush3.bf16.msra.mxu1 %v3393_v37 }
 0x42a   : > { %3183 = vmatprep.subr.bf16.mxu1 %v3698_v4 }
 0x42d   : > { %3184 = vmatpush3.bf16.msra.mxu1 %v3394_v38 }
 0x42e   : > { %3185 = vmatprep.subr.bf16.mxu1 %v3698_v4 }
 0x431   : > { %3186 = vmatpush3.bf16.msra.mxu1 %v3395_v39 }
 0x432   : > { %3187 = vmatprep.subr.bf16.mxu1 %v3698_v4 }
 0x435   : > { %3188 = vmatpush3.bf16.msra.mxu1 %v3396_v40 }
 0x436   : > { %3189 = vmatprep.subr.bf16.mxu1 %v3698_v4 }
 0x439   : > { %3190 = vmatpush3.bf16.msra.mxu1 %v3397_v41 }
 0x43a   : > { %3215 = vmatprep.subr.bf16.mxu1 %v3698_v4 }
 0x43c   : > { %3192 = vmatmul.mubr.bf16.vlgmr.msra.gmra.mrb[12].mxu1 %v4029_v44 }
 0x43d   : > { %3216 = vmatpush3.bf16.msra.mxu1 %v3398_v42  ;;  %3231 = vmatprep.mubr.msk.bf16.mxu1 %vm3699_vm0, %v3698_v4 }
 0x43e   : > { %3217 = vmatprep.subr.bf16.mxu1 %v3698_v4 }
 0x441   : > { %3218 = vmatpush3.bf16.msra.mxu1 %v3399_v43 }
 0x442   : > { %3219 = vmatprep.subr.bf16.mxu1 %v3698_v4 }
 0x445   : > { %3220 = vmatpush3.bf16.msra.mxu1 %v3400_v45 }
 0x446   : > { %3221 = vmatprep.subr.bf16.mxu1 %v3698_v4 }
 0x449   : > { %3222 = vmatpush3.bf16.msra.mxu1 %v3401_v46 }
 0x44a   : > { %3223 = vmatprep.subr.bf16.mxu1 %v3698_v4 }
 0x44d   : > { %3224 = vmatpush3.bf16.msra.mxu1 %v3402_v47 }
 0x44e   : > { %3225 = vmatprep.subr.bf16.mxu1 %v3698_v4 }
 0x451   : > { %3226 = vmatpush3.bf16.msra.mxu1 %v3403_v48 }
 0x452   : > { %3227 = vmatprep.subr.bf16.mxu1 %v3698_v4 }
 0x455   : > { %3228 = vmatpush3.bf16.msra.mxu1 %v3404_v49 }
 0x456   : > { %3229 = vmatprep.subr.bf16.mxu1 %v3698_v4 }
 0x459   : > { %3230 = vmatpush3.bf16.msra.mxu1 %v3405_v50 }
 0x45a   : > { %3259 = vmatprep.subr.bf16.mxu1 %v3698_v4 }
 0x45c   : > { %3232 = vmatmul.mubr.bf16.vlgmr.msra.gmra.mrb[16].mxu1 %v4029_v44 }
 0x45d   : > { %3267 = vmatprep.mubr.msk.bf16.mxu1 %vm3699_vm0, %v3698_v4  ;;  %3260 = vmatpush3.bf16.msra.mxu1 %v3406_v9 }
 0x45e   : > { %3261 = vmatprep.subr.bf16.mxu1 %v3698_v4 }
 0x461   : > { %3262 = vmatpush3.bf16.msra.mxu1 %v3407_v10 }
 0x462   : > { %3263 = vmatprep.subr.bf16.mxu1 %v3698_v4 }
 0x465   : > { %3264 = vmatpush3.bf16.msra.mxu1 %v3408_v11 }
 0x466   : > { %3265 = vmatprep.subr.bf16.mxu1 %v3698_v4 }
 0x469   : > { %3266 = vmatpush3.bf16.msra.mxu1 %v3409_v12 }
 0x4ef   : > { %v963_v51 = vpop.f32.mrb[8].mxu1 }
 0x4f0   : > { %v3173_v52 = vpop.f32.mrb[9].mxu1 }
 0x4f1   : > { %v966_v53 = vpop.f32.mrb[10].mxu1 }
 0x4f2   : > { %v3174_v54 = vpop.f32.mrb[11].mxu1 }
 0x4f3   : > { %v3502_v54 = vld [vmem:[%s3946_s21] sm:$0xff] }
 0x50f   : > { %v1082_v55 = vpop.f32.mrb[12].mxu1 }
 0x510   : > { %v3193_v56 = vpop.f32.mrb[13].mxu1 }
 0x511   : > { %v1085_v57 = vpop.f32.mrb[14].mxu1 }
 0x512   : > { %v1301_v58 = vpack.c.bf16 %v1085_v57, %v1082_v55  ;;  %v3194_v59 = vpop.f32.mrb[15].mxu1 }
 0x514   : > { %3238 = vmatmul.mubr.msk.bf16.vlgmr.msra.gmra.mrb[12].mxu0 %vm857_vm1, %v1301_v58  ;;  %v3503_v58 = vld [vmem:[%s3946_s21 + $0x8] sm:$0xff]  ;;  %s3620_s21 = sshll.u32 %s3701_s25, 4  ;;  %s3621_s21 = int_to_ptr.vmem [resolvable:$false] %s3620_s21 }
 0x515   : > { %3243 = vmatprep.mubr.msk.bf16.mxu0 %vm3699_vm0, %v3698_v4  ;;  %s3622_s20 = scalar_lea.vmem %s3621_s21, 512  ;;  %p3623_p8 = scmp.lt.s32.totalorder %s4540_s14, %s3621_s21 }
 0x516   : > { %p3624_p11 = scmp.lt.s32.totalorder %s3622_s20, %s3616_s29 }
 0x518   : > { %p3625_p13 = por %p3624_p11, %p3623_p8 }
 0x51a   : > { %p3626_p1 = pnand %p3625_p13, %p3619_p7 }
 0x52f   : > { %v1294_v60 = vpop.f32.mrb[16].mxu1 }
 0x530   : > { %v3233_v61 = vpop.f32.mrb[17].mxu1 }
 0x531   : > { %v1297_v44 = vpop.f32.mrb[18].mxu1  ;;  %v1611_v61 = vld [vmem:[%s4598_s9 + $0x20] sm:$0xff] }
 0x532   : > { %v1369_v62 = vpack.c.bf16 %v1297_v44, %v1294_v60  ;;  %v3234_v63 = vpop.f32.mrb[19].mxu1  ;;  %v1607_v60 = vld [vmem:[%s4598_s9] sm:$0xff]  ;;  %v1608_v44 = vld [vmem:[%s4598_s9 + $0x8] sm:$0xff] }
 0x533   : > { %v2877_v63 = vcombine.high %v1607_v60, %v1611_v61 }
 0x534   : > { %3242 = vmatpush3.bf16.msra.mxu0 %v1369_v62  ;;  %v2876_v62 = vcombine.low %v1607_v60, %v1611_v61 }
 0x535   : > { %3247 = vmatprep.subr.bf16.mxu0 %v3698_v4 }
 0x5e7   : > { %v1343_v0 = vpop.f32.mrb[12].mxu0 }
 0x5e8   : > { %v3239_v1 = vpop.f32.mrb[13].mxu0  ;;  %v1350_v2 = vsel %vm905_vm2, %v1343_v0, -inf }
 0x5e9   : > { %1351 = vmax.xlane.f32.xlu0 %v1350_v2  ;;  %v1346_v3 = vpop.f32.mrb[14].mxu0  ;;  %v1615_v1 = vld [vmem:[%s4598_s9 + $0x40] sm:$0xff] }
 0x5ea   : > { %v3240_v5 = vpop.f32.mrb[15].mxu0  ;;  %v1353_v6 = vsel %vm905_vm2, %v1346_v3, -inf  ;;  %v1619_v2 = vld [vmem:[%s4598_s9 + $0x60] sm:$0xff] }
 0x5eb   : > { %1354 = vmax.xlane.f32.xlu1 %v1353_v6  ;;  %v2885_v6 = vcombine.high %v1615_v1, %v1619_v2  ;;  %v2884_v10 = vcombine.low %v1615_v1, %v1619_v2  ;;  %v1668_v2 = vld [vmem:[%s4598_s9 + $0x1e8] sm:$0xff] }
 0x5ed   : > { %919 = vadd.xlane.f32.xlu0 %v918_v7  ;;  %v1616_v7 = vld [vmem:[%s4598_s9 + $0x48] sm:$0xff] }
 0x5ef   : > { %922 = vadd.xlane.f32.xlu1 %v921_v8  ;;  %v1620_v8 = vld [vmem:[%s4598_s9 + $0x68] sm:$0xff] }
 0x5f0   : > { %v2887_v9 = vcombine.high %v1616_v7, %v1620_v8  ;;  %v2886_v11 = vcombine.low %v1616_v7, %v1620_v8  ;;  %v3700_v8 = vmov 0  }
 0x676   : > { %v1352_v13 = vpop.xlane.xlu0 %1351 }
 0x677   : > { %v1356_v14 = vsub.f32 %v1343_v0, %v1352_v13  ;;  %v1612_v0 = vld [vmem:[%s4598_s9 + $0x28] sm:$0xff] }
 0x678   : > { %v1355_v15 = vpop.xlane.xlu1 %1354  ;;  %v2879_v5 = vcombine.high %v1608_v44, %v1612_v0 }
 0x679   : > { %v1358_v16 = vmul.f32 1.442695, %v1356_v14  ;;  %v1357_v17 = vsub.f32 %v1346_v3, %v1355_v15  ;;  %v2878_v3 = vcombine.low %v1608_v44, %v1612_v0  ;;  %v1663_v44 = vld [vmem:[%s4598_s9 + $0x1c0] sm:$0xff] }
 0x67a   : > { %v920_v18 = vpop.xlane.xlu0 %919  ;;  %2076 = vmatprep.subr.bf16.mxu1 %v2879_v5  ;;  %v1613_v5 = vld [vmem:[%s4598_s9 + $0x30] sm:$0xff] }
 0x67b   : > { %3454 = vpow2.f32 %v1358_v16  ;;  %v1360_v19 = vmul.f32 1.442695, %v1357_v17 }
 0x67c   : > { %3456 = vrcp.f32 %v920_v18  ;;  %v923_v20 = vpop.xlane.xlu1 %922 }
 0x67d   : > { %3458 = vpow2.f32 %v1360_v19 }
 0x67e   : > { %3460 = vrcp.f32 %v923_v20  ;;  %v1623_v20 = vld [vmem:[%s4598_s9 + $0x80] sm:$0xff] }
 0x685   : > { %v3455_v21 = vpop.eup %3454 }
 0x686   : > { %v3457_v22 = vpop.eup %3456  ;;  %v1362_v23 = vsel %vm905_vm2, %v3455_v21, 0.0 }
 0x687   : > { %v3459_v24 = vpop.eup %3458  ;;  %1363 = vadd.xlane.f32.xlu0 %v1362_v23  ;;  %v972_v28 = vmul.f32 %v3457_v22, %v963_v51  ;;  %v1624_v22 = vld [vmem:[%s4598_s9 + $0x88] sm:$0xff] }
 0x688   : > { %v3461_v25 = vpop.eup %3460  ;;  %v1365_v26 = vsel %vm905_vm2, %v3459_v24, 0.0  ;;  %v1368_v27 = vpack.c.bf16 %v3459_v24, %v3455_v21  ;;  %v1627_v21 = vld [vmem:[%s4598_s9 + $0xa0] sm:$0xff]  ;;  %v1628_v24 = vld [vmem:[%s4598_s9 + $0xa8] sm:$0xff] }
 0x689   : > { %v973_v29 = vmul.f32 %v3461_v25, %v966_v53  ;;  %1366 = vadd.xlane.f32.xlu1 %v1365_v26  ;;  %v2893_v23 = vcombine.high %v1623_v20, %v1627_v21  ;;  %v2892_v25 = vcombine.low %v1623_v20, %v1627_v21  ;;  %v2894_v26 = vcombine.low %v1624_v22, %v1628_v24 }
 0x68a   : > { %3244 = vmatmul.mubr.msk.bf16.vlgmr.msra.gmra.mrb[16].mxu0 %vm905_vm2, %v1368_v27  ;;  %v2895_v27 = vcombine.high %v1624_v22, %v1628_v24  ;;  %v2874_v24 = vld [vmem:[#allocation2] ss:$0 sm:$0xff] }
 0x68b   : > { %v974_v30 = vpack.c.bf16 %v973_v29, %v972_v28  ;;  %3255 = vmatprep.mubr.msk.bf16.mxu0 %vm3699_vm0, %v3698_v4  ;;  %3248 = vmatpush3.bf16.msra.mxu0 %v3410_v31  ;;  %v1631_v28 = vld [vmem:[%s4598_s9 + $0xc0] sm:$0xff] }
 0x68c   : > { %3249 = vmatprep.subr.bf16.mxu0 %v3698_v4  ;;  %v1635_v29 = vld [vmem:[%s4598_s9 + $0xe0] sm:$0xff] }
 0x68d   : > { %3268 = vmatmul.mubr.msk.bf16.vlgmr.msra.gmra.mrb[20].mxu1 %vm857_vm1, %v974_v30  ;;  %v1632_v30 = vld [vmem:[%s4598_s9 + $0xc8] sm:$0xff]  ;;  %v2901_v31 = vcombine.high %v1631_v28, %v1635_v29 }
 0x68e   : > { %2077 = vmatpush1.bf16.msra.mxu1 %v2878_v3  ;;  %v1609_v3 = vld [vmem:[%s4598_s9 + $0x10] sm:$0xff]  ;;  %2108 = vmatprep.mubr.bf16.mxu1 %v3700_v8 }
 0x68f   : > { %3250 = vmatpush3.bf16.msra.mxu0 %v3411_v32  ;;  %2078 = vmatprep.subr.bf16.mxu1 %v2887_v9  ;;  %v1636_v32 = vld [vmem:[%s4598_s9 + $0xe8] sm:$0xff]  ;;  %v2880_v9 = vcombine.low %v1609_v3, %v1613_v5 }
 0x690   : > { %3251 = vmatprep.subr.bf16.mxu0 %v3698_v4 }
 0x692   : > { %2079 = vmatpush1.bf16.msra.mxu1 %v2886_v11  ;;  %v1614_v11 = vld [vmem:[%s4598_s9 + $0x38] sm:$0xff] }
 0x693   : > { %3252 = vmatpush3.bf16.msra.mxu0 %v3412_v33  ;;  %2080 = vmatprep.subr.bf16.mxu1 %v2895_v27  ;;  %v2900_v33 = vcombine.low %v1631_v28, %v1635_v29  ;;  %v2875_v29 = vld [vmem:[#allocation5] ss:$0 sm:$0xff] }
 0x694   : > { %3253 = vmatprep.subr.bf16.mxu0 %v3698_v4 }
 0x696   : > { %2081 = vmatpush1.bf16.msra.mxu1 %v2894_v26 }
 0x697   : > { %3254 = vmatpush3.bf16.msra.mxu0 %v3413_v34  ;;  %v2902_v34 = vcombine.low %v1632_v30, %v1636_v32 }
 0x698   : > { %2033 = vmatprep.subr.bf16.mxu0 %v2877_v63  ;;  %v1664_v63 = vld [vmem:[%s4598_s9 + $0x1c8] sm:$0xff] }
 0x699   : > { %v2935_v7 = vcombine.high %v1664_v63, %v1668_v2 }
 0x714   : > { %v1364_v35 = vpop.xlane.xlu0 %1363 }
 0x715   : > { %3462 = vrcp.f32 %v1364_v35  ;;  %v2903_v35 = vcombine.high %v1632_v30, %v1636_v32  ;;  %v1621_v32 = vld [vmem:[%s4598_s9 + $0x70] sm:$0xff] }
 0x716   : > { %v1367_v36 = vpop.xlane.xlu1 %1366 }
 0x717   : > { %3464 = vrcp.f32 %v1367_v36  ;;  %2082 = vmatprep.subr.bf16.mxu1 %v2903_v35  ;;  %v1639_v36 = vld [vmem:[%s4598_s9 + $0x100] sm:$0xff] }
 0x718   : > { %2083 = vmatpush1.bf16.msra.mxu1 %v2902_v34 }
 0x71f   : > { %v3463_v38 = vpop.eup %3462 }
 0x721   : > { %v3465_v40 = vpop.eup %3464 }
 0x75d   : > { %v1407_v37 = vpop.f32.mrb[16].mxu0 }
 0x75e   : > { %v3245_v39 = vpop.f32.mrb[17].mxu0  ;;  %v1416_v42 = vmul.f32 %v3463_v38, %v1407_v37  ;;  %v1643_v37 = vld [vmem:[%s4598_s9 + $0x120] sm:$0xff]  ;;  %v1640_v38 = vld [vmem:[%s4598_s9 + $0x108] sm:$0xff] }
 0x75f   : > { %v1410_v41 = vpop.f32.mrb[18].mxu0  ;;  %v2909_v39 = vcombine.high %v1639_v36, %v1643_v37 }
 0x760   : > { %v1417_v43 = vmul.f32 %v3465_v40, %v1410_v41  ;;  %v1557_v45 = vpop.f32.mrb[20].mxu1  ;;  %v3246_v4 = vpop.f32.mrb[19].mxu0  ;;  %v1644_v40 = vld [vmem:[%s4598_s9 + $0x128] sm:$0xff]  ;;  %v2908_v41 = vcombine.low %v1639_v36, %v1643_v37 }
 0x761   : > { %v3269_v46 = vpop.f32.mrb[21].mxu1  ;;  %v1651_v4 = vld [vmem:[%s4598_s9 + $0x160] sm:$0xff] }
 0x762   : > { %v1418_v47 = vpack.c.bf16 %v1417_v43, %v1416_v42  ;;  %v1560_v48 = vpop.f32.mrb[22].mxu1  ;;  %v2910_v42 = vcombine.low %v1640_v38, %v1644_v40  ;;  %v2911_v43 = vcombine.high %v1640_v38, %v1644_v40  ;;  %v1648_v46 = vld [vmem:[%s4598_s9 + $0x148] sm:$0xff]  ;;  %v1625_v38 = vld [vmem:[%s4598_s9 + $0x90] sm:$0xff]  ;;  %v1626_v40 = vld [vmem:[%s4598_s9 + $0x98] sm:$0xff] }
 0x763   : > { %v3270_v49 = vpop.f32.mrb[23].mxu1 }
 0x764   : > { %3256 = vmatmul.mubr.msk.bf16.vlgmr.msra.gmra.mrb[20].mxu0 %vm857_vm1, %v1418_v47  ;;  %2084 = vmatprep.subr.bf16.mxu1 %v2911_v43 }
 0x765   : > { %2034 = vmatpush1.bf16.msra.mxu0 %v2876_v62  ;;  %2085 = vmatpush1.bf16.msra.mxu1 %v2910_v42  ;;  %v1667_v62 = vld [vmem:[%s4598_s9 + $0x1e0] sm:$0xff] }
 0x766   : > { %2035 = vmatprep.subr.bf16.mxu0 %v2885_v6  ;;  %v2932_v0 = vcombine.low %v1663_v44, %v1667_v62  ;;  %v2933_v1 = vcombine.high %v1663_v44, %v1667_v62  ;;  %v2934_v6 = vcombine.low %v1664_v63, %v1668_v2  ;;  %2065 = vmatprep.mubr.bf16.mxu0 %v3700_v8  ;;  %v1649_v63 = vld [vmem:[%s4598_s9 + $0x150] sm:$0xff]  ;;  %v1654_v2 = vld [vmem:[%s4598_s9 + $0x178] sm:$0xff] }
 0x769   : > { %2036 = vmatpush1.bf16.msra.mxu0 %v2884_v10  ;;  %v1610_v10 = vld [vmem:[%s4598_s9 + $0x18] sm:$0xff] }
 0x76a   : > { %2037 = vmatprep.subr.bf16.mxu0 %v2893_v23 }
 0x76d   : > { %2038 = vmatpush1.bf16.msra.mxu0 %v2892_v25 }
 0x76e   : > { %2039 = vmatprep.subr.bf16.mxu0 %v2901_v31  ;;  %v1617_v31 = vld [vmem:[%s4598_s9 + $0x50] sm:$0xff] }
 0x76f   : > { %v2889_v36 = vcombine.high %v1617_v31, %v1621_v32  ;;  %v2888_v42 = vcombine.low %v1617_v31, %v1621_v32  ;;  %v3417_v31 = vld [vmem:[#allocation8 + $0x80] sm:$0xff]   ;;  %v3418_v32 = vld [vmem:[#allocation8 + $0x48] sm:$0xff]  }
 0x771   : > { %2040 = vmatpush1.bf16.msra.mxu0 %v2900_v33  ;;  %v1618_v33 = vld [vmem:[%s4598_s9 + $0x58] sm:$0xff] }
 0x772   : > { %2041 = vmatprep.subr.bf16.mxu0 %v2909_v39  ;;  %v1629_v39 = vld [vmem:[%s4598_s9 + $0xb0] sm:$0xff] }
 0x775   : > { %2042 = vmatpush1.bf16.msra.mxu0 %v2908_v41  ;;  %v1630_v41 = vld [vmem:[%s4598_s9 + $0xb8] sm:$0xff] }
 0x837   : > { %v1489_v50 = vpop.f32.mrb[20].mxu0 }
 0x838   : > { %v1558_v51 = vadd.f32 %v1557_v45, %v1489_v50  ;;  %v3257_v52 = vpop.f32.mrb[21].mxu0  ;;  %v1647_v45 = vld [vmem:[%s4598_s9 + $0x140] sm:$0xff] }
 0x839   : > { %v1492_v53 = vpop.f32.mrb[22].mxu0  ;;  %v2917_v47 = vcombine.high %v1647_v45, %v1651_v4  ;;  %v2916_v49 = vcombine.low %v1647_v45, %v1651_v4  ;;  %v1655_v52 = vld [vmem:[%s4598_s9 + $0x180] sm:$0xff]  ;;  %v2897_v45 = vcombine.high %v1625_v38, %v1629_v39  ;;  %v2899_v4 = vcombine.high %v1626_v40, %v1630_v41 }
 0x83a   : > { %v4241_v55 = vadd.f32 %v3502_v54, %v1558_v51  ;;  %v1561_v56 = vadd.f32 %v1560_v48, %v1492_v53  ;;  %v3258_v57 = vpop.f32.mrb[23].mxu0  ;;  %v1652_v48 = vld [vmem:[%s4598_s9 + $0x168] sm:$0xff]  ;;  %v1659_v53 = vld [vmem:[%s4598_s9 + $0x1a0] sm:$0xff] }
 0x83b   : > { %v2918_v50 = vcombine.low %v1648_v46, %v1652_v48  ;;  %v2919_v51 = vcombine.high %v1648_v46, %v1652_v48  ;;  %2043 = vmatprep.subr.bf16.mxu0 %v2917_v47  ;;  %v1656_v54 = vld [vmem:[%s4598_s9 + $0x188] sm:$0xff]  ;;  %v1633_v46 = vld [vmem:[%s4598_s9 + $0xd0] sm:$0xff]  ;;  %v1634_v48 = vld [vmem:[%s4598_s9 + $0xd8] sm:$0xff] }
 0x83c   : > { %v4244_v59 = vadd.f32 %v3503_v58, %v1561_v56  ;;  %1568 = vadd.xlane.f32.xlu0 %v4241_v55  ;;  %2044 = vmatpush1.bf16.msra.mxu0 %v2916_v49  ;;  %v2925_v56 = vcombine.high %v1655_v52, %v1659_v53  ;;  %v1660_v57 = vld [vmem:[%s4598_s9 + $0x1a8] sm:$0xff]  ;;  %v2924_v58 = vcombine.low %v1655_v52, %v1659_v53  ;;  %v1637_v47 = vld [vmem:[%s4598_s9 + $0xf0] sm:$0xff]  ;;  %v1638_v49 = vld [vmem:[%s4598_s9 + $0xf8] sm:$0xff] }
 0x83d   : > { %2086 = vmatprep.subr.bf16.mxu1 %v2919_v51  ;;  %v2926_v60 = vcombine.low %v1656_v54, %v1660_v57  ;;  %v2927_v61 = vcombine.high %v1656_v54, %v1660_v57  ;;  %v2898_v51 = vcombine.low %v1626_v40, %v1630_v41  ;;  %v2905_v52 = vcombine.high %v1633_v46, %v1637_v47  ;;  %v1641_v54 = vld [vmem:[%s4598_s9 + $0x110] sm:$0xff]  ;;  %v1642_v57 = vld [vmem:[%s4598_s9 + $0x118] sm:$0xff]  ;;  %v3428_v40 = vld [vmem:[#allocation8 + $0x18] sm:$0xff]  }
 0x83e   : > { %1570 = vadd.xlane.f32.xlu1 %v4244_v59  ;;  %2087 = vmatpush1.bf16.msra.mxu1 %v2918_v50  ;;  %v2896_v50 = vcombine.low %v1625_v38, %v1629_v39  ;;  %v2907_v53 = vcombine.high %v1634_v48, %v1638_v49  ;;  %v3426_v38 = vld [vmem:[#allocation8 + $0x58] sm:$0xff]  }
 0x83f   : > { %2045 = vmatprep.subr.bf16.mxu0 %v2925_v56  ;;  %2088 = vmatprep.subr.bf16.mxu1 %v2927_v61  ;;  %v1645_v56 = vld [vmem:[%s4598_s9 + $0x130] sm:$0xff]  ;;  %v2906_v61 = vcombine.low %v1634_v48, %v1638_v49  ;;  %v3427_v39 = vld [vmem:[#allocation8 + $0xd8] sm:$0xff]  }
 0x840   : > { %2046 = vmatpush1.bf16.msra.mxu0 %v2924_v58  ;;  %v1646_v58 = vld [vmem:[%s4598_s9 + $0x138] sm:$0xff]  ;;  %v2913_v44 = vcombine.high %v1641_v54, %v1645_v56  ;;  %v3429_v41 = vld [vmem:[#allocation8 + $0x98] sm:$0xff]  }
 0x841   : > { %2047 = vmatprep.subr.bf16.mxu0 %v2933_v1  ;;  %v2915_v62 = vcombine.high %v1642_v57, %v1646_v58  ;;  %v1650_v1 = vld [vmem:[%s4598_s9 + $0x158] sm:$0xff] }
 0x842   : > { %2089 = vmatpush1.bf16.msra.mxu1 %v2926_v60  ;;  %v2904_v60 = vcombine.low %v1633_v46, %v1637_v47  ;;  %v3434_v46 = vld [vmem:[#allocation8 + $0x68] sm:$0xff]  }
 0x843   : > { %2090 = vmatprep.subr.bf16.mxu1 %v2935_v7  ;;  %v2923_v7 = vcombine.high %v1650_v1, %v1654_v2  ;;  %v3435_v47 = vld [vmem:[#allocation8 + $0xe8] sm:$0xff]  }
 0x844   : > { %2048 = vmatpush1.bf16.msra.mxu0 %v2932_v0  ;;  %v1653_v0 = vld [vmem:[%s4598_s9 + $0x170] sm:$0xff] }
 0x845   : > { %v3436_v48 = vld [vmem:[#allocation8 + $0x28] sm:$0xff]  }
 0x846   : > { %2091 = vmatpush1.bf16.msra.mxu1 %v2934_v6  ;;  %v2921_v6 = vcombine.high %v1649_v63, %v1653_v0  ;;  %v3437_v49 = vld [vmem:[#allocation8 + $0xa8] sm:$0xff]  }
 0x8c9   : > { %v1569_v12 = vpop.xlane.xlu0 %1568 }
 0x8ca   : > { %v1572_v13 = vmul.f32 0.0078125, %v1569_v12  ;;  %v2881_v12 = vcombine.high %v1609_v3, %v1613_v5  ;;  %v2912_v3 = vcombine.low %v1641_v54, %v1645_v56  ;;  %v2914_v5 = vcombine.low %v1642_v57, %v1646_v58  ;;  %v3442_v54 = vld [vmem:[#allocation8 + $0x78] sm:$0xff]  }
 0x8cb   : > { %v1571_v14 = vpop.xlane.xlu1 %1570  ;;  %v3443_v56 = vld [vmem:[#allocation8 + $0xf8] sm:$0xff]  }
 0x8cc   : > { %v4273_v15 = vsub.f32 %v4241_v55, %v1572_v13  ;;  %v1573_v16 = vmul.f32 0.0078125, %v1571_v14  ;;  %v2882_v13 = vcombine.low %v1610_v10, %v1614_v11  ;;  %v2883_v14 = vcombine.high %v1610_v10, %v1614_v11  ;;  %2119 = vmatprep.subr.bf16.mxu0 %v2881_v12  ;;  %v1658_v10 = vld [vmem:[%s4598_s9 + $0x198] sm:$0xff]  ;;  %v3444_v57 = vld [vmem:[#allocation8 + $0x38] sm:$0xff]  }
 0x8cd   : > { %v1662_v11 = vld [vmem:[%s4598_s9 + $0x1b8] sm:$0xff]  ;;  %v2920_v12 = vcombine.low %v1649_v63, %v1653_v0  ;;  %v3445_v58 = vld [vmem:[#allocation8 + $0xb8] sm:$0xff]  }
 0x8ce   : > { %v4276_v17 = vsub.f32 %v4244_v59, %v1573_v16  ;;  %v1576_v18 = vmul.f32 %v4273_v15, %v4273_v15  ;;  %2162 = vmatprep.subr.bf16.mxu1 %v2883_v14 }
 0x8d0   : > { %1578 = vadd.xlane.f32.xlu0 %v1576_v18  ;;  %v1577_v19 = vmul.f32 %v4276_v17, %v4276_v17 }
 0x8d2   : > { %1580 = vadd.xlane.f32.xlu1 %v1577_v19 }
 0x95d   : > { %v1579_v16 = vpop.xlane.xlu0 %1578 }
 0x95e   : > { %v1582_v18 = vmul.f32 0.0078125, %v1579_v16  ;;  %v2931_v16 = vcombine.high %v1658_v10, %v1662_v11 }
 0x95f   : > { %v1581_v19 = vpop.xlane.xlu1 %1580 }
 0x960   : > { %v1584_v20 = vadd.f32 1e-05, %v1582_v18  ;;  %v1583_v21 = vmul.f32 0.0078125, %v1581_v19  ;;  %v1665_v18 = vld [vmem:[%s4598_s9 + $0x1d0] sm:$0xff] }
 0x961   : > { %v1669_v19 = vld [vmem:[%s4598_s9 + $0x1f0] sm:$0xff] }
 0x962   : > { %3466 = vrsqrt.f32 %v1584_v20  ;;  %v1585_v22 = vadd.f32 1e-05, %v1583_v21  ;;  %v1666_v20 = vld [vmem:[%s4598_s9 + $0x1d8] sm:$0xff] }
 0x963   : > { %v1670_v21 = vld [vmem:[%s4598_s9 + $0x1f8] sm:$0xff] }
 0x964   : > { %3468 = vrsqrt.f32 %v1585_v22 }
 0x96c   : > { %v3467_v23 = vpop.eup %3466 }
 0x96d   : > { %v1588_v25 = vmul.f32 %v3467_v23, %v4273_v15  ;;  %v1622_v15 = vld [vmem:[%s4598_s9 + $0x78] sm:$0xff]  ;;  %v2930_v23 = vcombine.low %v1658_v10, %v1662_v11  ;;  %v4480_v10 = vld [vmem:[#allocation7] sm:$0xff] }
 0x96e   : > { %v3469_v26 = vpop.eup %3468  ;;  %v2891_v37 = vcombine.high %v1618_v33, %v1622_v15  ;;  %v2890_v43 = vcombine.low %v1618_v33, %v1622_v15  ;;  %v3419_v33 = vld [vmem:[#allocation8 + $0xc8] sm:$0xff]  }
 0x96f   : > { %v1589_v27 = vmul.f32 %v3469_v26, %v4276_v17  ;;  %v1596_v28 = vmul.f32 %v2874_v24, %v1588_v25  ;;  %v2939_v25 = vcombine.high %v1666_v20, %v1670_v21  ;;  %v2936_v26 = vcombine.low %v1665_v18, %v1669_v19  ;;  %v3420_v15 = vld [vmem:[#allocation8 + $0x8] sm:$0xff]  }
 0x971   : > { %v1597_v30 = vmul.f32 %v2874_v24, %v1589_v27  ;;  %v1604_v17 = vadd.f32 %v2875_v29, %v1596_v28  ;;  %v2937_v24 = vcombine.high %v1665_v18, %v1669_v19  ;;  %v2938_v27 = vcombine.low %v1666_v20, %v1670_v21  ;;  %v3414_v28 = vld [vmem:[#allocation8 + $0x40] sm:$0xff]  }
 0x973   : > { %v1605_v34 = vadd.f32 %v2875_v29, %v1597_v30  ;;  %v3415_v29 = vld [vmem:[#allocation8 + $0xc0] sm:$0xff]  }
 0x974   : > { %v3416_v30 = vld [vmem:[#allocation8] sm:$0xff]  }
 0x975   : > { %v4380_v35 = vpack.c.bf16 %v1605_v34, %v1604_v17  ;;  %v3421_v17 = vld [vmem:[#allocation8 + $0x88] sm:$0xff]   ;;  %v3422_v34 = vld [vmem:[#allocation8 + $0x50] sm:$0xff]  }
 0x977   : > { %2066 = vmatmul.mubr.bf16.vlgmr.msra.gmra.mrb[24].mxu0 %v4380_v35  ;;  %2109 = vmatmul.mubr.bf16.vlgmr.msra.gmra.mrb[24].mxu1 %v4380_v35 }
 0x978   : > { %2120 = vmatpush1.bf16.msra.mxu0 %v2880_v9  ;;  %2163 = vmatpush1.bf16.msra.mxu1 %v2882_v13  ;;  %v1661_v9 = vld [vmem:[%s4598_s9 + $0x1b0] sm:$0xff]  ;;  %v2922_v13 = vcombine.low %v1650_v1, %v1654_v2 }
 0x979   : > { %2121 = vmatprep.subr.bf16.mxu0 %v2889_v36  ;;  %2164 = vmatprep.subr.bf16.mxu1 %v2891_v37  ;;  %v3423_v36 = vld [vmem:[#allocation8 + $0xd0] sm:$0xff]  }
 0x97a   : > { %2151 = vmatprep.mubr.bf16.mxu0 %v3700_v8  ;;  %2194 = vmatprep.mubr.bf16.mxu1 %v3700_v8  ;;  %v1657_v8 = vld [vmem:[%s4598_s9 + $0x190] sm:$0xff]  ;;  %v3424_v37 = vld [vmem:[#allocation8 + $0x10] sm:$0xff]  }
 0x97b   : > { %v2929_v14 = vcombine.high %v1657_v8, %v1661_v9  ;;  %v2928_v22 = vcombine.low %v1657_v8, %v1661_v9 }
 0x97c   : > { %2122 = vmatpush1.bf16.msra.mxu0 %v2888_v42  ;;  %2165 = vmatpush1.bf16.msra.mxu1 %v2890_v43  ;;  %v3430_v42 = vld [vmem:[#allocation8 + $0x60] sm:$0xff]  }
 0x97d   : > { %2123 = vmatprep.subr.bf16.mxu0 %v2897_v45  ;;  %2166 = vmatprep.subr.bf16.mxu1 %v2899_v4  ;;  %v3431_v43 = vld [vmem:[#allocation8 + $0xe0] sm:$0xff]  }
 0x97e   : > { %v3432_v45 = vld [vmem:[#allocation8 + $0x20] sm:$0xff]  }
 0x97f   : > { %v3433_v4 = vld [vmem:[#allocation8 + $0xa0] sm:$0xff]  }
 0x980   : > { %2124 = vmatpush1.bf16.msra.mxu0 %v2896_v50  ;;  %2167 = vmatpush1.bf16.msra.mxu1 %v2898_v51  ;;  %v3438_v50 = vld [vmem:[#allocation8 + $0x70] sm:$0xff]  }
 0x981   : > { %2125 = vmatprep.subr.bf16.mxu0 %v2905_v52  ;;  %2168 = vmatprep.subr.bf16.mxu1 %v2907_v53  ;;  %v3439_v51 = vld [vmem:[#allocation8 + $0xf0] sm:$0xff]  }
 0x982   : > { %v3440_v52 = vld [vmem:[#allocation8 + $0x30] sm:$0xff]  }
 0x983   : > { %v3441_v53 = vld [vmem:[#allocation8 + $0xb0] sm:$0xff]  }
 0x984   : > { %2126 = vmatpush1.bf16.msra.mxu0 %v2904_v60  ;;  %2169 = vmatpush1.bf16.msra.mxu1 %v2906_v61 }
 0x985   : > { %2127 = vmatprep.subr.bf16.mxu0 %v2913_v44  ;;  %2170 = vmatprep.subr.bf16.mxu1 %v2915_v62 }
 0x988   : > { %2128 = vmatpush1.bf16.msra.mxu0 %v2912_v3  ;;  %2171 = vmatpush1.bf16.msra.mxu1 %v2914_v5  ;;  %v1673_v3 = vlaneseq }
 0x989   : > { %2129 = vmatprep.subr.bf16.mxu0 %v2921_v6  ;;  %2172 = vmatprep.subr.bf16.mxu1 %v2923_v7 }
 0x98a   : > { %v4474_v5 = vshrl.u32 %v1673_v3, 7 }
 0x98c   : > { %2130 = vmatpush1.bf16.msra.mxu0 %v2920_v12  ;;  %2173 = vmatpush1.bf16.msra.mxu1 %v2922_v13  ;;  %v1691_v6 = vsub.s32 4, %v4474_v5  ;;  %v1699_v7 = vsub.s32 6, %v4474_v5  ;;  %v1695_v8 = vsub.s32 5, %v4474_v5  ;;  %v1703_v9 = vsub.s32 7, %v4474_v5 }
 0x98d   : > { %2131 = vmatprep.subr.bf16.mxu0 %v2929_v14  ;;  %2174 = vmatprep.subr.bf16.mxu1 %v2931_v16  ;;  %v1687_v3 = vsub.s32 3, %v4474_v5 }
 0x98e   : > { %v1692_v11 = vrot.slane %v4480_v10, %v1691_v6  ;;  %v1700_v12 = vrot.slane %v4480_v10, %v1699_v7  ;;  %v1696_v13 = vrot.slane %v4480_v10, %v1695_v8  ;;  %v1704_v14 = vrot.slane %v4480_v10, %v1703_v9 }
 0x990   : > { %2132 = vmatpush1.bf16.msra.mxu0 %v2928_v22  ;;  %2175 = vmatpush1.bf16.msra.mxu1 %v2930_v23 }
 0x991   : > { %2133 = vmatprep.subr.bf16.mxu0 %v2937_v24  ;;  %2176 = vmatprep.subr.bf16.mxu1 %v2939_v25 }
 0x994   : > { %2134 = vmatpush1.bf16.msra.mxu0 %v2936_v26  ;;  %2177 = vmatpush1.bf16.msra.mxu1 %v2938_v27 }
 0x995   : > { %3059 = vmatprep.subr.bf16.mxu0 %v3414_v28  ;;  %3081 = vmatprep.subr.bf16.mxu1 %v3415_v29 }
 0x997   : > { %2152 = vmatmul.mubr.bf16.vlgmr.msra.gmra.mrb[28].mxu0 %v4380_v35  ;;  %2195 = vmatmul.mubr.bf16.vlgmr.msra.gmra.mrb[28].mxu1 %v4380_v35  ;;  %v3425_v35 = vld [vmem:[#allocation8 + $0x90] sm:$0xff]  }
 0x998   : > { %3060 = vmatpush3.bf16.msra.mxu0 %v3416_v30  ;;  %3082 = vmatpush3.bf16.msra.mxu1 %v3417_v31 }
 0x999   : > { %3061 = vmatprep.subr.bf16.mxu0 %v3418_v32  ;;  %3083 = vmatprep.subr.bf16.mxu1 %v3419_v33 }
 0x99c   : > { %3062 = vmatpush3.bf16.msra.mxu0 %v3420_v15  ;;  %3084 = vmatpush3.bf16.msra.mxu1 %v3421_v17 }
 0x99d   : > { %3063 = vmatprep.subr.bf16.mxu0 %v3422_v34  ;;  %3085 = vmatprep.subr.bf16.mxu1 %v3423_v36 }
 0x9a0   : > { %3064 = vmatpush3.bf16.msra.mxu0 %v3424_v37  ;;  %3086 = vmatpush3.bf16.msra.mxu1 %v3425_v35 }
 0x9a1   : > { %3065 = vmatprep.subr.bf16.mxu0 %v3426_v38  ;;  %3087 = vmatprep.subr.bf16.mxu1 %v3427_v39 }
 0x9a4   : > { %3066 = vmatpush3.bf16.msra.mxu0 %v3428_v40  ;;  %3088 = vmatpush3.bf16.msra.mxu1 %v3429_v41 }
 0x9a5   : > { %3067 = vmatprep.subr.bf16.mxu0 %v3430_v42  ;;  %3089 = vmatprep.subr.bf16.mxu1 %v3431_v43 }
 0x9a8   : > { %3068 = vmatpush3.bf16.msra.mxu0 %v3432_v45  ;;  %3090 = vmatpush3.bf16.msra.mxu1 %v3433_v4 }
 0x9a9   : > { %3069 = vmatprep.subr.bf16.mxu0 %v3434_v46  ;;  %3091 = vmatprep.subr.bf16.mxu1 %v3435_v47 }
 0x9ac   : > { %3070 = vmatpush3.bf16.msra.mxu0 %v3436_v48  ;;  %3092 = vmatpush3.bf16.msra.mxu1 %v3437_v49 }
 0x9ad   : > { %3071 = vmatprep.subr.bf16.mxu0 %v3438_v50  ;;  %3093 = vmatprep.subr.bf16.mxu1 %v3439_v51  ;;  %v1675_v51 = vsub.s32 0, %v4474_v5 }
 0x9af   : > { %v1676_v6 = vrot.slane %v4480_v10, %v1675_v51 }
 0x9b0   : > { %3072 = vmatpush3.bf16.msra.mxu0 %v3440_v52  ;;  %3094 = vmatpush3.bf16.msra.mxu1 %v3441_v53 }
 0x9b1   : > { %3073 = vmatprep.subr.bf16.mxu0 %v3442_v54  ;;  %3095 = vmatprep.subr.bf16.mxu1 %v3443_v56  ;;  %v1683_v54 = vsub.s32 2, %v4474_v5 }
 0x9b3   : > { %v1684_v7 = vrot.slane %v4480_v10, %v1683_v54 }
 0x9b4   : > { %3074 = vmatpush3.bf16.msra.mxu0 %v3444_v57  ;;  %3096 = vmatpush3.bf16.msra.mxu1 %v3445_v58  ;;  %v1679_v57 = vsub.s32 1, %v4474_v5 }
 0x9b6   : > { %v1680_v8 = vrot.slane %v4480_v10, %v1679_v57 }
 0xa4a   : > { %v4458_v60 = vpop.f32.mrb[24].mxu0  ;;  %v4460_v61 = vpop.f32.mrb[24].mxu1 }
 0xa4b   : > { %v4462_v44 = vpop.f32.mrb[25].mxu0  ;;  %v4464_v62 = vpop.f32.mrb[25].mxu1 }
 0xa4c   : > { %v4466_v63 = vpop.f32.mrb[26].mxu0  ;;  %v4468_v0 = vpop.f32.mrb[26].mxu1 }
 0xa4d   : > { %v4470_v1 = vpop.f32.mrb[27].mxu0  ;;  %v4472_v2 = vpop.f32.mrb[27].mxu1 }
 0xa6a   : > { %v2153_v16 = vpop.f32.mrb[28].mxu0  ;;  %v2196_v18 = vpop.f32.mrb[28].mxu1 }
 0xa6b   : > { %v4486_v19 = vadd.f32 %v2153_v16, %v1692_v11  ;;  %v4488_v20 = vadd.f32 %v2196_v18, %v1700_v12  ;;  %v2155_v21 = vpop.f32.mrb[29].mxu0  ;;  %v2198_v22 = vpop.f32.mrb[29].mxu1  ;;  %v2111_v18 = vadd.f32 %v4460_v61, %v1684_v7 }
 0xa6c   : > { %v4490_v23 = vadd.f32 %v2155_v21, %v1696_v13  ;;  %v4492_v24 = vadd.f32 %v2198_v22, %v1704_v14  ;;  %v2157_v25 = vpop.f32.mrb[30].mxu0  ;;  %v2200_v26 = vpop.f32.mrb[30].mxu1  ;;  %v2070_v22 = vadd.f32 %v4462_v44, %v1680_v8 }
 0xa6d   : > { %v2940_v27 = vmul.f32 -1.442695, %v4486_v19  ;;  %v2942_v28 = vmul.f32 -1.442695, %v4488_v20  ;;  %v4496_v29 = vadd.f32 %v2157_v25, %v1692_v11  ;;  %v4498_v30 = vadd.f32 %v2200_v26, %v1700_v12  ;;  %v2159_v31 = vpop.f32.mrb[31].mxu0  ;;  %v2202_v32 = vpop.f32.mrb[31].mxu1 }
 0xa6e   : > { %v2941_v33 = vmul.f32 -1.442695, %v4490_v23  ;;  %v2943_v15 = vmul.f32 -1.442695, %v4492_v24  ;;  %v4502_v17 = vadd.f32 %v2159_v31, %v1696_v13  ;;  %v4504_v34 = vadd.f32 %v2202_v32, %v1704_v14 }
 0xa6f   : > { %3470 = vpow2.f32 %v2940_v27  ;;  %v2944_v36 = vmul.f32 -1.442695, %v4496_v29  ;;  %v2946_v37 = vmul.f32 -1.442695, %v4498_v30  ;;  %v1688_v11 = vrot.slane %v4480_v10, %v1687_v3 }
 0xa70   : > { %3472 = vpow2.f32 %v2942_v28  ;;  %v2945_v35 = vmul.f32 -1.442695, %v4502_v17  ;;  %v2947_v38 = vmul.f32 -1.442695, %v4504_v34  ;;  %v2068_v13 = vadd.f32 %v4458_v60, %v1676_v6 }
 0xa71   : > { %3474 = vpow2.f32 %v2941_v33  ;;  %v2113_v28 = vadd.f32 %v4464_v62, %v1688_v11 }
 0xa72   : > { %3476 = vpow2.f32 %v2943_v15 }
 0xa73   : > { %3478 = vpow2.f32 %v2944_v36 }
 0xa74   : > { %3480 = vpow2.f32 %v2946_v37 }
 0xa75   : > { %3482 = vpow2.f32 %v2945_v35 }
 0xa76   : > { %3484 = vpow2.f32 %v2947_v38 }
 0xa79   : > { %v3471_v39 = vpop.eup %3470 }
 0xa7a   : > { %v3473_v40 = vpop.eup %3472  ;;  %v2229_v41 = vadd.f32 1.0, %v3471_v39 }
 0xa7b   : > { %v3475_v42 = vpop.eup %3474  ;;  %v2231_v43 = vadd.f32 1.0, %v3473_v40 }
 0xa7c   : > { %v3477_v45 = vpop.eup %3476  ;;  %3486 = vrcp.f32 %v2229_v41  ;;  %v2230_v4 = vadd.f32 1.0, %v3475_v42 }
 0xa7d   : > { %v3479_v46 = vpop.eup %3478  ;;  %3488 = vrcp.f32 %v2231_v43  ;;  %v2232_v47 = vadd.f32 1.0, %v3477_v45 }
 0xa7e   : > { %v3481_v48 = vpop.eup %3480  ;;  %3490 = vrcp.f32 %v2230_v4  ;;  %v2233_v49 = vadd.f32 1.0, %v3479_v46 }
 0xa7f   : > { %v3483_v50 = vpop.eup %3482  ;;  %3492 = vrcp.f32 %v2232_v47  ;;  %v2235_v52 = vadd.f32 1.0, %v3481_v48 }
 0xa80   : > { %v3485_v53 = vpop.eup %3484  ;;  %3494 = vrcp.f32 %v2233_v49  ;;  %v2234_v56 = vadd.f32 1.0, %v3483_v50 }
 0xa81   : > { %3496 = vrcp.f32 %v2235_v52  ;;  %v2236_v58 = vadd.f32 1.0, %v3485_v53 }
 0xa82   : > { %3498 = vrcp.f32 %v2234_v56 }
 0xa83   : > { %3500 = vrcp.f32 %v2236_v58 }
 0xa86   : > { %v3487_v9 = vpop.eup %3486 }
 0xa87   : > { %v3489_v12 = vpop.eup %3488  ;;  %v2253_v14 = vmul.f32 %v3487_v9, %v4486_v19  ;;  %v2072_v19 = vadd.f32 %v4466_v63, %v1676_v6 }
 0xa88   : > { %v3491_v16 = vpop.eup %3490  ;;  %v2255_v5 = vmul.f32 %v3489_v12, %v4488_v20  ;;  %v2115_v20 = vadd.f32 %v4468_v0, %v1684_v7 }
 0xa89   : > { %v3493_v21 = vpop.eup %3492  ;;  %v2261_v25 = vmul.f32 %v2253_v14, %v2068_v13  ;;  %v2254_v26 = vmul.f32 %v3491_v16, %v4490_v23  ;;  %v2074_v23 = vadd.f32 %v4470_v1, %v1680_v8 }
 0xa8a   : > { %v3495_v27 = vpop.eup %3494  ;;  %v2263_v10 = vmul.f32 %v2255_v5, %v2111_v18  ;;  %v2256_v31 = vmul.f32 %v3493_v21, %v4492_v24  ;;  %v2117_v24 = vadd.f32 %v4472_v2, %v1688_v11  ;;  %v2948_v2 = vld [vmem:[%s4601_s12] ss:$0 sm:$0xff] }
 0xa8b   : > { %v3497_v60 = vpop.eup %3496  ;;  %v2262_v32 = vmul.f32 %v2254_v26, %v2070_v22  ;;  %v2257_v61 = vmul.f32 %v3495_v27, %v4496_v29 }
 0xa8c   : > { %v3499_v33 = vpop.eup %3498  ;;  %v2264_v15 = vmul.f32 %v2256_v31, %v2113_v28  ;;  %v2259_v44 = vmul.f32 %v3497_v60, %v4498_v30 }
 0xa8d   : > { %v3501_v36 = vpop.eup %3500  ;;  %v2265_v62 = vmul.f32 %v2257_v61, %v2072_v19  ;;  %v2258_v37 = vmul.f32 %v3499_v33, %v4502_v17 }
 0xa8e   : > { %v2267_v35 = vmul.f32 %v2259_v44, %v2115_v20  ;;  %v2260_v63 = vmul.f32 %v3501_v36, %v4504_v34 }
 0xa8f   : > { %v2269_v38 = vpack.c.bf16 %v2265_v62, %v2261_v25  ;;  %v2266_v29 = vmul.f32 %v2258_v37, %v2074_v23 }
 0xa90   : > { %v2271_v39 = vpack.c.bf16 %v2267_v35, %v2263_v10  ;;  %v2268_v40 = vmul.f32 %v2260_v63, %v2117_v24 }
 0xa91   : > { %v2270_v0 = vpack.c.bf16 %v2266_v29, %v2262_v32 }
 0xa92   : > { %v2272_v41 = vpack.c.bf16 %v2268_v40, %v2264_v15 }
 0xa93   : > { %2568 = vmatprep.mubr.bf16.mxu0 %v2270_v0 }
 0xa94   : > { %2609 = vmatprep.mubr.bf16.mxu1 %v2272_v41  ;;  %2569 = vmatmul.mubr.bf16.vlgmr.msra.gmra.mrb[32].mxu0 %v2269_v38 }
 0xa95   : > { %2610 = vmatmul.mubr.bf16.vlgmr.msra.gmra.mrb[32].mxu1 %v2271_v39 }
 0xb67   : > { %v3075_v1 = vpop.f32.mrb[32].mxu0 }
 0xb68   : > { %v3097_v30 = vpop.f32.mrb[32].mxu1  ;;  %v3076_v17 = vpop.f32.mrb[33].mxu0 }
 0xb69   : > { %v3077_v34 = vadd.f32 %v3076_v17, %v3075_v1  ;;  %v3098_v42 = vpop.f32.mrb[33].mxu1  ;;  %v3078_v43 = vpop.f32.mrb[34].mxu0 }
 0xb6a   : > { %v3099_v45 = vadd.f32 %v3098_v42, %v3097_v30  ;;  %v3100_v4 = vpop.f32.mrb[34].mxu1  ;;  %v3079_v46 = vpop.f32.mrb[35].mxu0 }
 0xb6b   : > { %v2571_v47 = vadd.f32 %v3077_v34, %v2948_v2  ;;  %v3080_v48 = vadd.f32 %v3079_v46, %v3078_v43  ;;  %v3101_v49 = vpop.f32.mrb[35].mxu1 }
 0xb6c   : > { %v3102_v50 = vadd.f32 %v3101_v49, %v3100_v4 }
 0xb6d   : > { %v2612_v51 = vadd.f32 %v3099_v45, %v2571_v47  ;;  %v2574_v52 = vadd.f32 %v3080_v48, %v2948_v2 }
 0xb6f   : > { %v2618_v53 = vadd.f32 %v2612_v51, %v4241_v55  ;;  %v2615_v54 = vadd.f32 %v3102_v50, %v2574_v52 }
 0xb71   : > { %2620 = vst [vmem:[%s487_s27] sm:$0xff] %v2618_v53  ;;  %v2619_v56 = vadd.f32 %v2615_v54, %v4244_v59 }
 0xb73   : > { %2621 = vst [vmem:[%s487_s27 + $0x8] sm:$0xff] %v2619_v56 }
 0xb74   : > { %3629 = shalt.err (!%p3626_p1)
}
 0xb75   : > { %s3630_s30 = scalar_lea.hbm %s4546_s28, 256  ;;  %s3634_s15 = scalar_lea.hbm %s4632_s13, 512 }
 0xb76   : > { %p3631_p0 = scmp.ne.s32.totalorder %s4546_s28, %s3630_s30  ;;  %p3635_p9 = scmp.lt.u32.totalorder %s4546_s28, %s4632_s13 }
 0xb77   : > { %p3636_p12 = scmp.lt.u32.totalorder %s3634_s15, %s3630_s30  ;;  %p3638_p2 = scmp.lt.u32.totalorder %s3630_s30, %s4546_s28 }
 0xb78   : > { %p3632_p6 = pnand %p3631_p0, %p4633_p3 }
 0xb79   : > { %p3637_p10 = por %p3636_p12, %p3635_p9 }
 0xb7a   : > { %p3633_p5 = pneg %p3632_p6 }
 0xb7b   : > { %p3639_p4 = por %p3638_p2, %p3637_p10 }
 0xb7d   : > { %p3640_p7 = pnand %p3639_p4, %p3633_p5 }
 0xb7f   : > { %3643 = shalt.err (!%p3640_p7)
}
 0xb80   : > { %s3702_s24 = smov 128   ;;  %s3703_s16 = smov 8  }
 0xb81   : > { %3287 = dma.vmem_to_hbm [thread:$0]  (%p4633_p3), %s4540_s14, 256, %s4546_s28, %s4548_s17, %s3702_s24, %s3702_s24, %s3703_s16  }
 0xb82 PF: > { %s4634_s29 = sld [smem:[#allocation17_spill]]  ;;  %s4635_s25 = sld [smem:[#allocation15_spill]] }
 0xb83   : > { %s4636_s21 = sld [smem:[#allocation20_spill]] }
 0xb88   : > { %p3314_p8 = scmp.ge.s32.totalorder %s4634_s29, 2  ;;  %s2651_s20 = sand.u32 1, %s4635_s25  }
 0xb89   : > { %p4637_p11 = scmp.ne.s32.totalorder %s4636_s21, 0  ;;  %s2652_s30 = scalar_lea.sflag [#allocation4], %s2651_s20 }
 0xb8b   : > { %p3303_p13 = pnand %p3314_p8, %p4637_p11 }
 0xb8d   : > { %3673 = dma.done.wait (!%p3303_p13), %s2652_s30, 256  }
 0xb8e   : > { %3675 = vsyncadd (!%p3303_p13), %s2652_s30, 4294967040  ;;  %s4638_s28 = sld [smem:[#allocation18_spill]]  ;;  %s4639_s23 = sld [smem:[#allocation16_spill]] }
 0xb8f   : > { %s4640_s27 = sld [smem:[#allocation19_spill]]  ;;  %s4641_s25 = smov %s3682_s26 }
 0xb94   : > { %p26_p1 = scmp.ge.s32.totalorder %s4638_s28, 4   ;;  %s4642_s26 = smov %s4639_s23 }
 0xb96   :  { %28 = sbr.rel (!%p26_p1) target bundleno = 8 (0x8), region = 128 }
 0xb9d   :  { %2657 = vsyncpa [#allocation3], 1 }
 0xb9e   :  { %2659 = vsyncpa [#allocation3 + $0x1], 1 }
 0xb9f   :  { %2660 = vsyncpa [#allocation6], 1 }
 0xba0   :  { %2661 = vsyncpa [#allocation9], 1 }
 0xba1   :  { %2662 = vsyncpa [#allocation4], 1 }
 0xba2   :  { %2664 = vsyncpa [#allocation4 + $0x1], 1 }

</bundles_post_ra>
